<compile_context>
chip_gen: v6e
topology: v6e:2x2x1
jax: 0.10.0
libtpu: 0.0.40
codegen_flags: <defaults>
</compile_context>

<pallas_src>
import functools

import jax
import jax.numpy as jnp
from jax import lax
from jax.experimental import pallas as pl
from jax.experimental.pallas import tpu as pltpu


def _sqvae_kernel(
    # tiled input
    x_ref,        # (1, Cin, TN)  tokens of one (batch, tile) grid step
    # resident parameters (constant block index -> DMA'd once, stay in VMEM)
    we1_ref,      # (D, Cin)   encoder layer 1 weight (transposed)
    be1_ref,      # (D, 1)     encoder layer 1 bias (column)
    we2_ref,      # (D, D)
    be2_ref,      # (D, 1)
    cb_ref,       # (K, D)     codebook
    cbt_ref,      # (D, K)     codebook^T (tiny; avoids in-kernel transpose)
    csq_ref,      # (K, 1)     sum(codebook**2, -1), precomputed in wrapper
    logvar_ref,   # (1, 1)     log_var_q
    wd1_ref,      # (D, D)
    bd1_ref,      # (D, 1)
    wd2_ref,      # (Cout, D)
    bd2_ref,      # (Cout, 1)
    # outputs
    xrec_ref,     # (1, Cout, TN)
    loss_ref, loss_rec_ref, rmse_ref, loss_lat_ref, perp_ref,  # (1,1) each
    # scratch accumulators (persist across the whole grid)
    se_acc, kldd_acc, kldc_acc,   # (1,1) f32
    cnt_acc,                      # (K,1) f32 codebook usage counts
    *,
    batch_size,
    dim_x,
    n_tokens,
    size_dict,
):
    f32 = jnp.float32
    b = pl.program_id(0)
    t = pl.program_id(1)
    is_first = jnp.logical_and(b == 0, t == 0)
    is_last = jnp.logical_and(b == pl.num_programs(0) - 1,
                              t == pl.num_programs(1) - 1)

    @pl.when(is_first)
    def _():
        se_acc[...] = jnp.zeros_like(se_acc)
        kldd_acc[...] = jnp.zeros_like(kldd_acc)
        kldc_acc[...] = jnp.zeros_like(kldc_acc)
        cnt_acc[...] = jnp.zeros_like(cnt_acc)

    x = x_ref[0].astype(f32)                                    # (Cin, TN)

    # ---------------- Encoder (pointwise conv MLP, channel-major) -----------
    h = jnp.dot(we1_ref[...], x, preferred_element_type=f32) + be1_ref[...]
    h = jnp.maximum(h, 0.0)
    z = jnp.dot(we2_ref[...], h, preferred_element_type=f32) + be2_ref[...]   # (D, TN)

    # ---------------- Gaussian SQuantizer (deterministic path) --------------
    log_var_q = logvar_ref[...]                                 # (1, 1)
    precision_q = 1.0 / jnp.maximum(jnp.exp(log_var_q), 1e-10)  # (1, 1)

    zc = jnp.dot(cb_ref[...], z, preferred_element_type=f32)    # (K, TN)
    # Per-token constant -0.5*p*|z|^2 cancels in softmax/log-softmax/argmax,
    # so it is dropped from the logits (identical probs / selection).
    logit = precision_q * zc - (0.5 * precision_q) * csq_ref[...]   # (K, TN)

    m = jnp.max(logit, axis=0, keepdims=True)                   # (1, TN)
    lm = logit - m                                              # (K, TN)
    e = jnp.exp(lm)                                             # (K, TN)
    denom = jnp.sum(e, axis=0, keepdims=True)                   # (1, TN)
    s2 = jnp.sum(e * lm, axis=0, keepdims=True)                 # (1, TN)
    # sum_k p_k * log p_k  ==  s2/denom - log(denom)   (fused, no (K,TN) probs)
    row_kld = s2 / denom - jnp.log(denom)                       # (1, TN)

    # deterministic quantization: leftmost argmax over the codebook axis
    iota = lax.broadcasted_iota(jnp.int32, logit.shape, 0)      # (K, TN)
    is_max = logit >= m
    idx = jnp.min(jnp.where(is_max, iota, size_dict), axis=0, keepdims=True)  # (1, TN)
    onehot = (iota == idx).astype(f32)                          # (K, TN)
    z_q = jnp.dot(cbt_ref[...], onehot, preferred_element_type=f32)  # (D, TN)

    # ---------------- Decoder (pointwise conv MLP) ---------------------------
    hd = jnp.dot(wd1_ref[...], z_q, preferred_element_type=f32) + bd1_ref[...]
    hd = jnp.maximum(hd, 0.0)
    x_rec = jnp.dot(wd2_ref[...], hd, preferred_element_type=f32) + bd2_ref[...]  # (Cout, TN)
    xrec_ref[0] = x_rec.astype(xrec_ref.dtype)                  # lane-dense store

    # ---------------- Accumulate raw sums (linear, safe to tile) ------------
    se_acc[...] += jnp.sum((x_rec - x) ** 2, keepdims=True)     # (1, 1)
    kldd_acc[...] += jnp.sum(row_kld, keepdims=True)            # (1, 1)
    kldc_acc[...] += jnp.sum((z - z_q) ** 2, keepdims=True)     # (1, 1)
    cnt_acc[...] += jnp.sum(onehot, axis=1, keepdims=True)      # (K, 1)

    # ---------------- Finalize (nonlinear ops only on the last step) --------
    @pl.when(is_last)
    def _():
        se = se_acc[...] / batch_size
        loss_rec = dim_x * jnp.log(se) / 2.0
        rmse = jnp.sqrt(se / dim_x)

        kld_discrete = kldd_acc[...] / batch_size
        kld_continuous = 0.5 * precision_q * kldc_acc[...] / batch_size
        loss_latent = kld_discrete + kld_continuous

        avg_probs = cnt_acc[...] / n_tokens                     # (K, 1)
        perplexity = jnp.exp(-jnp.sum(avg_probs * jnp.log(avg_probs + 1e-7),
                                      keepdims=True))           # (1, 1)

        loss_ref[...] = loss_latent + loss_rec
        loss_rec_ref[...] = loss_rec
        rmse_ref[...] = rmse
        loss_lat_ref[...] = loss_latent
        perp_ref[...] = perplexity


def _pick_token_tile(hw, cap=2048):
    """Largest multiple of 128 that divides hw (capped); else the full extent."""
    if hw % 128 != 0:
        return hw
    best = 128
    t = 128
    while t <= min(hw, cap):
        if hw % t == 0:
            best = t
        t += 128
    return best


def _resident_spec(shape):
    zeros = (0,) * len(shape)
    return pl.BlockSpec(shape, lambda b, t, _z=zeros: _z)


def sqvae_forward(x_nchw, params, *, max_token_tile=2048):
    """Full SQVAE forward. x_nchw: (B, C, H, W) float32 (PyTorch convention)."""
    B, Cin, H, W = x_nchw.shape
    D = params["w_enc1"].shape[1]       # width == dim_dict
    K = params["codebook"].shape[0]     # size_dict
    Cout = params["w_dec2"].shape[1]
    assert Cout == Cin
    HW = H * W
    TN = _pick_token_tile(HW, max_token_tile)
    num_tiles = HW // TN
    dim_x = float(Cout * H * W)         # np.prod(x_rec.shape[1:]) in PyTorch
    n_tokens = float(B * HW)

    # NCHW is already channel-major: (B, C, H, W) -> (B, C, H*W) is a free
    # reshape, no transpose / extra HBM pass needed for the token layout.
    x_tok = x_nchw.reshape(B, Cin, HW)

    cb = params["codebook"].astype(jnp.float32)
    operands = (
        x_tok,
        jnp.transpose(params["w_enc1"]),            # (D, Cin)
        params["b_enc1"].reshape(D, 1),
        jnp.transpose(params["w_enc2"]),            # (D, D)
        params["b_enc2"].reshape(D, 1),
        cb,                                         # (K, D)
        jnp.transpose(cb),                          # (D, K)
        jnp.sum(cb * cb, axis=1, keepdims=True),    # (K, 1), hoisted c_sq
        params["log_var_q"].reshape(1, 1),
        jnp.transpose(params["w_dec1"]),            # (D, D)
        params["b_dec1"].reshape(D, 1),
        jnp.transpose(params["w_dec2"]),            # (Cout, D)
        params["b_dec2"].reshape(Cout, 1),
    )

    in_specs = [pl.BlockSpec((1, Cin, TN), lambda b, t: (b, 0, t))]
    in_specs += [_resident_spec(a.shape) for a in operands[1:]]

    scalar_spec = pl.BlockSpec((1, 1), lambda b, t: (0, 0))
    out_specs = (
        pl.BlockSpec((1, Cout, TN), lambda b, t: (b, 0, t)),
        scalar_spec, scalar_spec, scalar_spec, scalar_spec, scalar_spec,
    )
    out_shapes = (
        jax.ShapeDtypeStruct((B, Cout, HW), jnp.float32),   # x_rec (token layout)
        jax.ShapeDtypeStruct((1, 1), jnp.float32),          # loss
        jax.ShapeDtypeStruct((1, 1), jnp.float32),          # loss_rec
        jax.ShapeDtypeStruct((1, 1), jnp.float32),          # rmse
        jax.ShapeDtypeStruct((1, 1), jnp.float32),          # loss_latent
        jax.ShapeDtypeStruct((1, 1), jnp.float32),          # perplexity
    )

    kernel = functools.partial(
        _sqvae_kernel,
        batch_size=float(B),
        dim_x=dim_x,
        n_tokens=n_tokens,
        size_dict=K,
    )

    (x_rec_tok, loss, loss_rec, rmse, loss_lat, perp) = pl.pallas_call(
        kernel,
        out_shape=out_shapes,
        grid=(B, num_tiles),
        in_specs=in_specs,
        out_specs=out_specs,
        scratch_shapes=[
            pltpu.VMEM((1, 1), jnp.float32),    # se accumulator
            pltpu.VMEM((1, 1), jnp.float32),    # discrete-KL accumulator
            pltpu.VMEM((1, 1), jnp.float32),    # continuous-KL accumulator
            pltpu.VMEM((K, 1), jnp.float32),    # codebook usage counts
        ],
        compiler_params=pltpu.CompilerParams(
            # All grid steps accumulate into shared scratch -> sequential.
            dimension_semantics=("arbitrary", "arbitrary"),
            vmem_limit_bytes=32 * 1024 * 1024,
        ),
    )(*operands)

    # Free reshape back to NCHW (token layout is already channel-major).
    x_rec = x_rec_tok.reshape(B, Cout, H, W)

    loss = loss[0, 0]
    metrics = {
        "rmse": rmse[0, 0],
        "loss": loss,
        "loss_rec": loss_rec[0, 0],
        "loss_latent": loss_lat[0, 0],
        "perplexity": perp[0, 0],
    }
    return loss, x_rec, metrics


def init_params(key, in_ch=4, width=32, size_dict=64):
    """Deterministic synthetic parameter init (shapes implied by the module)."""
    ks = jax.random.split(key, 8)
    f = jnp.float32
    return {
        "w_enc1": 0.2 * jax.random.normal(ks[0], (in_ch, width), f),
        "b_enc1": jnp.zeros((1, width), f),
        "w_enc2": 0.2 * jax.random.normal(ks[1], (width, width), f),
        "b_enc2": jnp.zeros((1, width), f),
        "codebook": jax.random.normal(ks[2], (size_dict, width), f),
        "log_var_q": jnp.zeros((1, 1), f),
        "w_dec1": 0.2 * jax.random.normal(ks[3], (width, width), f),
        "b_dec1": jnp.zeros((1, width), f),
        "w_dec2": 0.2 * jax.random.normal(ks[4], (width, in_ch), f),
        "b_dec2": jnp.zeros((1, in_ch), f),
    }


if __name__ == "__main__":
    key = jax.random.PRNGKey(0)
    k_x, k_p = jax.random.split(key)

    B, C, H, W = 2, 4, 16, 16           # small NCHW input, PyTorch convention
    width = 32                          # kwargs_encdec['width'] == dim_dict
    size_dict = 64                      # codebook size

    x = jax.random.normal(k_x, (B, C, H, W), jnp.float32)
    params = init_params(k_p, in_ch=C, width=width, size_dict=size_dict)

    loss, x_rec, metrics = jax.jit(sqvae_forward)(x, params)
    jax.block_until_ready((loss, x_rec, metrics))

    assert x_rec.shape == (B, C, H, W)
    assert bool(jnp.isfinite(loss))
    assert bool(jnp.isfinite(metrics["perplexity"]))
    print("KERNEL_OK")
</pallas_src>

<mosaic_0001>
module attributes {stable_mosaic.version = 11 : i64} {
  func.func @_sqvae_kernel(%arg0: i32, %arg1: i32, %arg2: memref<1x4x256xf32, #tpu.memory_space<vmem>>, %arg3: memref<32x4xf32, #tpu.memory_space<vmem>>, %arg4: memref<32x1xf32, #tpu.memory_space<vmem>>, %arg5: memref<32x32xf32, #tpu.memory_space<vmem>>, %arg6: memref<32x1xf32, #tpu.memory_space<vmem>>, %arg7: memref<64x32xf32, #tpu.memory_space<vmem>>, %arg8: memref<32x64xf32, #tpu.memory_space<vmem>>, %arg9: memref<64x1xf32, #tpu.memory_space<vmem>>, %arg10: memref<1x1xf32, #tpu.memory_space<vmem>>, %arg11: memref<32x32xf32, #tpu.memory_space<vmem>>, %arg12: memref<32x1xf32, #tpu.memory_space<vmem>>, %arg13: memref<4x32xf32, #tpu.memory_space<vmem>>, %arg14: memref<4x1xf32, #tpu.memory_space<vmem>>, %arg15: memref<1x4x256xf32, #tpu.memory_space<vmem>>, %arg16: memref<1x1xf32, #tpu.memory_space<vmem>>, %arg17: memref<1x1xf32, #tpu.memory_space<vmem>>, %arg18: memref<1x1xf32, #tpu.memory_space<vmem>>, %arg19: memref<1x1xf32, #tpu.memory_space<vmem>>, %arg20: memref<1x1xf32, #tpu.memory_space<vmem>>, %arg21: memref<1x1xf32, #tpu.memory_space<vmem>>, %arg22: memref<1x1xf32, #tpu.memory_space<vmem>>, %arg23: memref<1x1xf32, #tpu.memory_space<vmem>>, %arg24: memref<64x1xf32, #tpu.memory_space<vmem>>) attributes {dimension_semantics = [#tpu.dimension_semantics<arbitrary>, #tpu.dimension_semantics<arbitrary>], iteration_bounds = array<i64: 2, 1>, scalar_prefetch = 0 : i64, scratch_operands = 4 : i64, tpu.core_type = #tpu.core_type<tc>, window_params = [{transform_indices = @transform_0, window_bounds = array<i64: 1, 4, 256>}, {pipeline_mode = #tpu.pipeline_mode<synchronous>, transform_indices = @transform_1, window_bounds = array<i64: 32, 4>}, {pipeline_mode = #tpu.pipeline_mode<synchronous>, transform_indices = @transform_2, window_bounds = array<i64: 32, 1>}, {pipeline_mode = #tpu.pipeline_mode<synchronous>, transform_indices = @transform_3, window_bounds = array<i64: 32, 32>}, {pipeline_mode = #tpu.pipeline_mode<synchronous>, transform_indices = @transform_4, window_bounds = array<i64: 32, 1>}, {pipeline_mode = #tpu.pipeline_mode<synchronous>, transform_indices = @transform_5, window_bounds = array<i64: 64, 32>}, {pipeline_mode = #tpu.pipeline_mode<synchronous>, transform_indices = @transform_6, window_bounds = array<i64: 32, 64>}, {pipeline_mode = #tpu.pipeline_mode<synchronous>, transform_indices = @transform_7, window_bounds = array<i64: 64, 1>}, {pipeline_mode = #tpu.pipeline_mode<synchronous>, transform_indices = @transform_8, window_bounds = array<i64: 1, 1>}, {pipeline_mode = #tpu.pipeline_mode<synchronous>, transform_indices = @transform_9, window_bounds = array<i64: 32, 32>}, {pipeline_mode = #tpu.pipeline_mode<synchronous>, transform_indices = @transform_10, window_bounds = array<i64: 32, 1>}, {pipeline_mode = #tpu.pipeline_mode<synchronous>, transform_indices = @transform_11, window_bounds = array<i64: 4, 32>}, {pipeline_mode = #tpu.pipeline_mode<synchronous>, transform_indices = @transform_12, window_bounds = array<i64: 4, 1>}, {transform_indices = @transform_13, window_bounds = array<i64: 1, 4, 256>}, {pipeline_mode = #tpu.pipeline_mode<synchronous>, transform_indices = @transform_14, window_bounds = array<i64: 1, 1>}, {pipeline_mode = #tpu.pipeline_mode<synchronous>, transform_indices = @transform_15, window_bounds = array<i64: 1, 1>}, {pipeline_mode = #tpu.pipeline_mode<synchronous>, transform_indices = @transform_16, window_bounds = array<i64: 1, 1>}, {pipeline_mode = #tpu.pipeline_mode<synchronous>, transform_indices = @transform_17, window_bounds = array<i64: 1, 1>}, {pipeline_mode = #tpu.pipeline_mode<synchronous>, transform_indices = @transform_18, window_bounds = array<i64: 1, 1>}]} {
    %c0_i32 = arith.constant 0 : i32
    %0 = arith.cmpi eq, %arg0, %c0_i32 : i32
    %c0_i32_0 = arith.constant 0 : i32
    %1 = arith.cmpi eq, %arg1, %c0_i32_0 : i32
    %2 = arith.andi %0, %1 : i1
    %c1_i32 = arith.constant 1 : i32
    %3 = arith.cmpi eq, %arg0, %c1_i32 : i32
    %c0_i32_1 = arith.constant 0 : i32
    %4 = arith.cmpi eq, %arg1, %c0_i32_1 : i32
    %5 = arith.andi %3, %4 : i1
    %6 = arith.extui %2 : i1 to i32
    %c0_i32_2 = arith.constant 0 : i32
    %7 = arith.cmpi ne, %6, %c0_i32_2 : i32
    scf.if %7 {
      %cst_67 = arith.constant 0.000000e+00 : f32
      %115 = vector.broadcast %cst_67 : f32 to vector<1x1xf32>
      %c0_68 = arith.constant 0 : index
      %c0_69 = arith.constant 0 : index
      %116 = vector.load %arg21[%c0_68, %c0_69] : memref<1x1xf32, #tpu.memory_space<vmem>>, vector<1x1xf32>
      tpu.vector_store %arg21[%c0_68, %c0_69], %115 {strides = array<i32>} : memref<1x1xf32, #tpu.memory_space<vmem>>, vector<1x1xf32>,
      %cst_70 = arith.constant 0.000000e+00 : f32
      %117 = vector.broadcast %cst_70 : f32 to vector<1x1xf32>
      %c0_71 = arith.constant 0 : index
      %c0_72 = arith.constant 0 : index
      %118 = vector.load %arg22[%c0_71, %c0_72] : memref<1x1xf32, #tpu.memory_space<vmem>>, vector<1x1xf32>
      tpu.vector_store %arg22[%c0_71, %c0_72], %117 {strides = array<i32>} : memref<1x1xf32, #tpu.memory_space<vmem>>, vector<1x1xf32>,
      %cst_73 = arith.constant 0.000000e+00 : f32
      %119 = vector.broadcast %cst_73 : f32 to vector<1x1xf32>
      %c0_74 = arith.constant 0 : index
      %c0_75 = arith.constant 0 : index
      %120 = vector.load %arg23[%c0_74, %c0_75] : memref<1x1xf32, #tpu.memory_space<vmem>>, vector<1x1xf32>
      tpu.vector_store %arg23[%c0_74, %c0_75], %119 {strides = array<i32>} : memref<1x1xf32, #tpu.memory_space<vmem>>, vector<1x1xf32>,
      %cst_76 = arith.constant 0.000000e+00 : f32
      %121 = vector.broadcast %cst_76 : f32 to vector<64x1xf32>
      %c0_77 = arith.constant 0 : index
      %c0_78 = arith.constant 0 : index
      %122 = vector.load %arg24[%c0_77, %c0_78] : memref<64x1xf32, #tpu.memory_space<vmem>>, vector<64x1xf32>
      tpu.vector_store %arg24[%c0_77, %c0_78], %121 {strides = array<i32>} : memref<64x1xf32, #tpu.memory_space<vmem>>, vector<64x1xf32>,
    } else {
    }
    %c0 = arith.constant 0 : index
    %c0_3 = arith.constant 0 : index
    %c0_4 = arith.constant 0 : index
    %8 = vector.load %arg2[%c0, %c0_3, %c0_4] : memref<1x4x256xf32, #tpu.memory_space<vmem>>, vector<1x4x256xf32>
    %9 = vector.shape_cast %8 : vector<1x4x256xf32> to vector<4x256xf32>
    %c0_5 = arith.constant 0 : index
    %c0_6 = arith.constant 0 : index
    %10 = vector.load %arg3[%c0_5, %c0_6] : memref<32x4xf32, #tpu.memory_space<vmem>>, vector<32x4xf32>
    %cst = arith.constant dense<0.000000e+00> : vector<32x256xf32>
    %11 = tpu.matmul %10, %9, %cst {dimension_numbers = #tpu.dot_dimension_numbers<[1], [0], [0], [1], [0, 0, 1, 1], [], []>} : vector<32x4xf32>, vector<4x256xf32>, vector<32x256xf32> -> vector<32x256xf32>
    %c0_7 = arith.constant 0 : index
    %c0_8 = arith.constant 0 : index
    %12 = vector.load %arg4[%c0_7, %c0_8] : memref<32x1xf32, #tpu.memory_space<vmem>>, vector<32x1xf32>
    %13 = vector.broadcast %12 : vector<32x1xf32> to vector<32x256xf32>
    %14 = arith.addf %11, %13 : vector<32x256xf32>
    %cst_9 = arith.constant 0.000000e+00 : f32
    %15 = vector.broadcast %cst_9 : f32 to vector<32x256xf32>
    %16 = arith.maximumf %14, %15 : vector<32x256xf32>
    %c0_10 = arith.constant 0 : index
    %c0_11 = arith.constant 0 : index
    %17 = vector.load %arg5[%c0_10, %c0_11] : memref<32x32xf32, #tpu.memory_space<vmem>>, vector<32x32xf32>
    %cst_12 = arith.constant dense<0.000000e+00> : vector<32x256xf32>
    %18 = tpu.matmul %17, %16, %cst_12 {dimension_numbers = #tpu.dot_dimension_numbers<[1], [0], [0], [1], [0, 0, 1, 1], [], []>} : vector<32x32xf32>, vector<32x256xf32>, vector<32x256xf32> -> vector<32x256xf32>
    %c0_13 = arith.constant 0 : index
    %c0_14 = arith.constant 0 : index
    %19 = vector.load %arg6[%c0_13, %c0_14] : memref<32x1xf32, #tpu.memory_space<vmem>>, vector<32x1xf32>
    %20 = vector.broadcast %19 : vector<32x1xf32> to vector<32x256xf32>
    %21 = arith.addf %18, %20 : vector<32x256xf32>
    %c0_15 = arith.constant 0 : index
    %c0_16 = arith.constant 0 : index
    %22 = vector.load %arg10[%c0_15, %c0_16] : memref<1x1xf32, #tpu.memory_space<vmem>>, vector<1x1xf32>
    %23 = math.exp %22 : vector<1x1xf32>
    %cst_17 = arith.constant 1.000000e-10 : f32
    %24 = vector.broadcast %cst_17 : f32 to vector<1x1xf32>
    %25 = arith.maximumf %23, %24 : vector<1x1xf32>
    %cst_18 = arith.constant 1.000000e+00 : f32
    %26 = vector.broadcast %cst_18 : f32 to vector<1x1xf32>
    %27 = arith.divf %26, %25 : vector<1x1xf32>
    %c0_19 = arith.constant 0 : index
    %c0_20 = arith.constant 0 : index
    %28 = vector.load %arg7[%c0_19, %c0_20] : memref<64x32xf32, #tpu.memory_space<vmem>>, vector<64x32xf32>
    %cst_21 = arith.constant dense<0.000000e+00> : vector<64x256xf32>
    %29 = tpu.matmul %28, %21, %cst_21 {dimension_numbers = #tpu.dot_dimension_numbers<[1], [0], [0], [1], [0, 0, 1, 1], [], []>} : vector<64x32xf32>, vector<32x256xf32>, vector<64x256xf32> -> vector<64x256xf32>
    %30 = vector.broadcast %27 : vector<1x1xf32> to vector<64x256xf32>
    %31 = arith.mulf %30, %29 : vector<64x256xf32>
    %cst_22 = arith.constant 5.000000e-01 : f32
    %32 = vector.broadcast %cst_22 : f32 to vector<1x1xf32>
    %33 = arith.mulf %32, %27 : vector<1x1xf32>
    %c0_23 = arith.constant 0 : index
    %c0_24 = arith.constant 0 : index
    %34 = vector.load %arg9[%c0_23, %c0_24] : memref<64x1xf32, #tpu.memory_space<vmem>>, vector<64x1xf32>
    %35 = vector.broadcast %33 : vector<1x1xf32> to vector<64x1xf32>
    %36 = arith.mulf %35, %34 : vector<64x1xf32>
    %37 = vector.broadcast %36 : vector<64x1xf32> to vector<64x256xf32>
    %38 = arith.subf %31, %37 : vector<64x256xf32>
    %cst_25 = arith.constant dense<0xFF800000> : vector<256xf32>
    %39 = vector.multi_reduction <maximumf>, %38, %cst_25 [0] : vector<64x256xf32> to vector<256xf32>
    %40 = vector.shape_cast %39 : vector<256xf32> to vector<1x256xf32>
    %41 = vector.broadcast %40 : vector<1x256xf32> to vector<64x256xf32>
    %42 = arith.subf %38, %41 : vector<64x256xf32>
    %43 = math.exp %42 : vector<64x256xf32>
    %cst_26 = arith.constant dense<0.000000e+00> : vector<256xf32>
    %44 = vector.multi_reduction <add>, %43, %cst_26 [0] : vector<64x256xf32> to vector<256xf32>
    %45 = vector.shape_cast %44 : vector<256xf32> to vector<1x256xf32>
    %46 = arith.mulf %43, %42 : vector<64x256xf32>
    %cst_27 = arith.constant dense<0.000000e+00> : vector<256xf32>
    %47 = vector.multi_reduction <add>, %46, %cst_27 [0] : vector<64x256xf32> to vector<256xf32>
    %48 = vector.shape_cast %47 : vector<256xf32> to vector<1x256xf32>
    %49 = arith.divf %48, %45 : vector<1x256xf32>
    %50 = math.log %45 : vector<1x256xf32>
    %51 = arith.subf %49, %50 : vector<1x256xf32>
    %52 = tpu.iota {dimensions = array<i32: 0>} : vector<64x256xi32>
    %53 = vector.broadcast %40 : vector<1x256xf32> to vector<64x256xf32>
    %54 = arith.cmpf oge, %38, %53 : vector<64x256xf32>
    %c64_i32 = arith.constant 64 : i32
    %55 = vector.broadcast %c64_i32 : i32 to vector<64x256xi32>
    %56 = arith.select %54, %52, %55 : vector<64x256xi1>, vector<64x256xi32>
    %cst_28 = arith.constant dense<2147483647> : vector<256xi32>
    %57 = vector.multi_reduction <minsi>, %56, %cst_28 [0] : vector<64x256xi32> to vector<256xi32>
    %58 = vector.shape_cast %57 : vector<256xi32> to vector<1x256xi32>
    %59 = vector.broadcast %58 : vector<1x256xi32> to vector<64x256xi32>
    %60 = arith.cmpi eq, %52, %59 : vector<64x256xi32>
    %61 = arith.extui %60 : vector<64x256xi1> to vector<64x256xi32>
    %62 = arith.sitofp %61 : vector<64x256xi32> to vector<64x256xf32>
    %c0_29 = arith.constant 0 : index
    %c0_30 = arith.constant 0 : index
    %63 = vector.load %arg8[%c0_29, %c0_30] : memref<32x64xf32, #tpu.memory_space<vmem>>, vector<32x64xf32>
    %cst_31 = arith.constant dense<0.000000e+00> : vector<32x256xf32>
    %64 = tpu.matmul %63, %62, %cst_31 {dimension_numbers = #tpu.dot_dimension_numbers<[1], [0], [0], [1], [0, 0, 1, 1], [], []>} : vector<32x64xf32>, vector<64x256xf32>, vector<32x256xf32> -> vector<32x256xf32>
    %c0_32 = arith.constant 0 : index
    %c0_33 = arith.constant 0 : index
    %65 = vector.load %arg11[%c0_32, %c0_33] : memref<32x32xf32, #tpu.memory_space<vmem>>, vector<32x32xf32>
    %cst_34 = arith.constant dense<0.000000e+00> : vector<32x256xf32>
    %66 = tpu.matmul %65, %64, %cst_34 {dimension_numbers = #tpu.dot_dimension_numbers<[1], [0], [0], [1], [0, 0, 1, 1], [], []>} : vector<32x32xf32>, vector<32x256xf32>, vector<32x256xf32> -> vector<32x256xf32>
    %c0_35 = arith.constant 0 : index
    %c0_36 = arith.constant 0 : index
    %67 = vector.load %arg12[%c0_35, %c0_36] : memref<32x1xf32, #tpu.memory_space<vmem>>, vector<32x1xf32>
    %68 = vector.broadcast %67 : vector<32x1xf32> to vector<32x256xf32>
    %69 = arith.addf %66, %68 : vector<32x256xf32>
    %cst_37 = arith.constant 0.000000e+00 : f32
    %70 = vector.broadcast %cst_37 : f32 to vector<32x256xf32>
    %71 = arith.maximumf %69, %70 : vector<32x256xf32>
    %c0_38 = arith.constant 0 : index
    %c0_39 = arith.constant 0 : index
    %72 = vector.load %arg13[%c0_38, %c0_39] : memref<4x32xf32, #tpu.memory_space<vmem>>, vector<4x32xf32>
    %cst_40 = arith.constant dense<0.000000e+00> : vector<4x256xf32>
    %73 = tpu.matmul %72, %71, %cst_40 {dimension_numbers = #tpu.dot_dimension_numbers<[1], [0], [0], [1], [0, 0, 1, 1], [], []>} : vector<4x32xf32>, vector<32x256xf32>, vector<4x256xf32> -> vector<4x256xf32>
    %c0_41 = arith.constant 0 : index
    %c0_42 = arith.constant 0 : index
    %74 = vector.load %arg14[%c0_41, %c0_42] : memref<4x1xf32, #tpu.memory_space<vmem>>, vector<4x1xf32>
    %75 = vector.broadcast %74 : vector<4x1xf32> to vector<4x256xf32>
    %76 = arith.addf %73, %75 : vector<4x256xf32>
    %c0_43 = arith.constant 0 : index
    %c0_44 = arith.constant 0 : index
    %c0_45 = arith.constant 0 : index
    %77 = vector.load %arg15[%c0_43, %c0_44, %c0_45] : memref<1x4x256xf32, #tpu.memory_space<vmem>>, vector<1x4x256xf32>
    %78 = vector.shape_cast %77 : vector<1x4x256xf32> to vector<4x256xf32>
    %79 = vector.shape_cast %76 : vector<4x256xf32> to vector<1x4x256xf32>
    tpu.vector_store %arg15[%c0_43, %c0_44, %c0_45], %79 {strides = array<i32>} : memref<1x4x256xf32, #tpu.memory_space<vmem>>, vector<1x4x256xf32>,
    %c0_46 = arith.constant 0 : index
    %c0_47 = arith.constant 0 : index
    %80 = vector.load %arg21[%c0_46, %c0_47] : memref<1x1xf32, #tpu.memory_space<vmem>>, vector<1x1xf32>
    %81 = arith.subf %76, %9 : vector<4x256xf32>
    %82 = arith.mulf %81, %81 : vector<4x256xf32>
    %83 = vector.shape_cast %82 : vector<4x256xf32> to vector<1x4x256xf32>
    %cst_48 = arith.constant dense<0.000000e+00> : vector<1xf32>
    %84 = vector.multi_reduction <add>, %83, %cst_48 [1, 2] : vector<1x4x256xf32> to vector<1xf32>
    %85 = vector.shape_cast %84 : vector<1xf32> to vector<1x1x1xf32>
    %86 = vector.extract %85[0, 0, 0] : f32 from vector<1x1x1xf32>
    %87 = vector.broadcast %86 : f32 to vector<1x1xf32>
    %88 = arith.addf %80, %87 : vector<1x1xf32>
    %c0_49 = arith.constant 0 : index
    %c0_50 = arith.constant 0 : index
    %89 = vector.load %arg21[%c0_49, %c0_50] : memref<1x1xf32, #tpu.memory_space<vmem>>, vector<1x1xf32>
    tpu.vector_store %arg21[%c0_49, %c0_50], %88 {strides = array<i32>} : memref<1x1xf32, #tpu.memory_space<vmem>>, vector<1x1xf32>,
    %c0_51 = arith.constant 0 : index
    %c0_52 = arith.constant 0 : index
    %90 = vector.load %arg22[%c0_51, %c0_52] : memref<1x1xf32, #tpu.memory_space<vmem>>, vector<1x1xf32>
    %91 = vector.shape_cast %51 : vector<1x256xf32> to vector<1x1x256xf32>
    %cst_53 = arith.constant dense<0.000000e+00> : vector<1xf32>
    %92 = vector.multi_reduction <add>, %91, %cst_53 [1, 2] : vector<1x1x256xf32> to vector<1xf32>
    %93 = vector.shape_cast %92 : vector<1xf32> to vector<1x1x1xf32>
    %94 = vector.extract %93[0, 0, 0] : f32 from vector<1x1x1xf32>
    %95 = vector.broadcast %94 : f32 to vector<1x1xf32>
    %96 = arith.addf %90, %95 : vector<1x1xf32>
    %c0_54 = arith.constant 0 : index
    %c0_55 = arith.constant 0 : index
    %97 = vector.load %arg22[%c0_54, %c0_55] : memref<1x1xf32, #tpu.memory_space<vmem>>, vector<1x1xf32>
    tpu.vector_store %arg22[%c0_54, %c0_55], %96 {strides = array<i32>} : memref<1x1xf32, #tpu.memory_space<vmem>>, vector<1x1xf32>,
    %c0_56 = arith.constant 0 : index
    %c0_57 = arith.constant 0 : index
    %98 = vector.load %arg23[%c0_56, %c0_57] : memref<1x1xf32, #tpu.memory_space<vmem>>, vector<1x1xf32>
    %99 = arith.subf %21, %64 : vector<32x256xf32>
    %100 = arith.mulf %99, %99 : vector<32x256xf32>
    %101 = vector.shape_cast %100 : vector<32x256xf32> to vector<1x32x256xf32>
    %cst_58 = arith.constant dense<0.000000e+00> : vector<1xf32>
    %102 = vector.multi_reduction <add>, %101, %cst_58 [1, 2] : vector<1x32x256xf32> to vector<1xf32>
    %103 = vector.shape_cast %102 : vector<1xf32> to vector<1x1x1xf32>
    %104 = vector.extract %103[0, 0, 0] : f32 from vector<1x1x1xf32>
    %105 = vector.broadcast %104 : f32 to vector<1x1xf32>
    %106 = arith.addf %98, %105 : vector<1x1xf32>
    %c0_59 = arith.constant 0 : index
    %c0_60 = arith.constant 0 : index
    %107 = vector.load %arg23[%c0_59, %c0_60] : memref<1x1xf32, #tpu.memory_space<vmem>>, vector<1x1xf32>
    tpu.vector_store %arg23[%c0_59, %c0_60], %106 {strides = array<i32>} : memref<1x1xf32, #tpu.memory_space<vmem>>, vector<1x1xf32>,
    %c0_61 = arith.constant 0 : index
    %c0_62 = arith.constant 0 : index
    %108 = vector.load %arg24[%c0_61, %c0_62] : memref<64x1xf32, #tpu.memory_space<vmem>>, vector<64x1xf32>
    %cst_63 = arith.constant dense<0.000000e+00> : vector<64xf32>
    %109 = vector.multi_reduction <add>, %62, %cst_63 [1] : vector<64x256xf32> to vector<64xf32>
    %110 = vector.shape_cast %109 : vector<64xf32> to vector<64x1xf32>
    %111 = arith.addf %108, %110 : vector<64x1xf32>
    %c0_64 = arith.constant 0 : index
    %c0_65 = arith.constant 0 : index
    %112 = vector.load %arg24[%c0_64, %c0_65] : memref<64x1xf32, #tpu.memory_space<vmem>>, vector<64x1xf32>
    tpu.vector_store %arg24[%c0_64, %c0_65], %111 {strides = array<i32>} : memref<64x1xf32, #tpu.memory_space<vmem>>, vector<64x1xf32>,
    %113 = arith.extui %5 : i1 to i32
    %c0_i32_66 = arith.constant 0 : i32
    %114 = arith.cmpi ne, %113, %c0_i32_66 : i32
    scf.if %114 {
      %c0_67 = arith.constant 0 : index
      %c0_68 = arith.constant 0 : index
      %115 = vector.load %arg21[%c0_67, %c0_68] : memref<1x1xf32, #tpu.memory_space<vmem>>, vector<1x1xf32>
      %cst_69 = arith.constant 2.000000e+00 : f32
      %116 = vector.broadcast %cst_69 : f32 to vector<1x1xf32>
      %117 = arith.divf %115, %116 : vector<1x1xf32>
      %118 = math.log %117 : vector<1x1xf32>
      %cst_70 = arith.constant 1.024000e+03 : f32
      %119 = vector.broadcast %cst_70 : f32 to vector<1x1xf32>
      %120 = arith.mulf %119, %118 : vector<1x1xf32>
      %cst_71 = arith.constant 2.000000e+00 : f32
      %121 = vector.broadcast %cst_71 : f32 to vector<1x1xf32>
      %122 = arith.divf %120, %121 : vector<1x1xf32>
      %cst_72 = arith.constant 1.024000e+03 : f32
      %123 = vector.broadcast %cst_72 : f32 to vector<1x1xf32>
      %124 = arith.divf %117, %123 : vector<1x1xf32>
      %125 = math.sqrt %124 : vector<1x1xf32>
      %c0_73 = arith.constant 0 : index
      %c0_74 = arith.constant 0 : index
      %126 = vector.load %arg22[%c0_73, %c0_74] : memref<1x1xf32, #tpu.memory_space<vmem>>, vector<1x1xf32>
      %cst_75 = arith.constant 2.000000e+00 : f32
      %127 = vector.broadcast %cst_75 : f32 to vector<1x1xf32>
      %128 = arith.divf %126, %127 : vector<1x1xf32>
      %cst_76 = arith.constant 5.000000e-01 : f32
      %129 = vector.broadcast %cst_76 : f32 to vector<1x1xf32>
      %130 = arith.mulf %129, %27 : vector<1x1xf32>
      %c0_77 = arith.constant 0 : index
      %c0_78 = arith.constant 0 : index
      %131 = vector.load %arg23[%c0_77, %c0_78] : memref<1x1xf32, #tpu.memory_space<vmem>>, vector<1x1xf32>
      %132 = arith.mulf %130, %131 : vector<1x1xf32>
      %cst_79 = arith.constant 2.000000e+00 : f32
      %133 = vector.broadcast %cst_79 : f32 to vector<1x1xf32>
      %134 = arith.divf %132, %133 : vector<1x1xf32>
      %135 = arith.addf %128, %134 : vector<1x1xf32>
      %c0_80 = arith.constant 0 : index
      %c0_81 = arith.constant 0 : index
      %136 = vector.load %arg24[%c0_80, %c0_81] : memref<64x1xf32, #tpu.memory_space<vmem>>, vector<64x1xf32>
      %cst_82 = arith.constant 5.120000e+02 : f32
      %137 = vector.broadcast %cst_82 : f32 to vector<64x1xf32>
      %138 = arith.divf %136, %137 : vector<64x1xf32>
      %cst_83 = arith.constant 1.000000e-07 : f32
      %139 = vector.broadcast %cst_83 : f32 to vector<64x1xf32>
      %140 = arith.addf %138, %139 : vector<64x1xf32>
      %141 = math.log %140 : vector<64x1xf32>
      %142 = arith.mulf %138, %141 : vector<64x1xf32>
      %143 = vector.shape_cast %142 : vector<64x1xf32> to vector<1x64x1xf32>
      %cst_84 = arith.constant dense<0.000000e+00> : vector<1xf32>
      %144 = vector.multi_reduction <add>, %143, %cst_84 [1, 2] : vector<1x64x1xf32> to vector<1xf32>
      %145 = vector.shape_cast %144 : vector<1xf32> to vector<1x1x1xf32>
      %146 = vector.extract %145[0, 0, 0] : f32 from vector<1x1x1xf32>
      %147 = vector.broadcast %146 : f32 to vector<1x1xf32>
      %cst_85 = arith.constant 0.000000e+00 : f32
      %148 = vector.broadcast %cst_85 : f32 to vector<1x1xf32>
      %149 = arith.subf %148, %147 : vector<1x1xf32>
      %150 = math.exp %149 : vector<1x1xf32>
      %151 = arith.addf %135, %122 : vector<1x1xf32>
      %c0_86 = arith.constant 0 : index
      %c0_87 = arith.constant 0 : index
      %152 = vector.load %arg16[%c0_86, %c0_87] : memref<1x1xf32, #tpu.memory_space<vmem>>, vector<1x1xf32>
      tpu.vector_store %arg16[%c0_86, %c0_87], %151 {strides = array<i32>} : memref<1x1xf32, #tpu.memory_space<vmem>>, vector<1x1xf32>,
      %c0_88 = arith.constant 0 : index
      %c0_89 = arith.constant 0 : index
      %153 = vector.load %arg17[%c0_88, %c0_89] : memref<1x1xf32, #tpu.memory_space<vmem>>, vector<1x1xf32>
      tpu.vector_store %arg17[%c0_88, %c0_89], %122 {strides = array<i32>} : memref<1x1xf32, #tpu.memory_space<vmem>>, vector<1x1xf32>,
      %c0_90 = arith.constant 0 : index
      %c0_91 = arith.constant 0 : index
      %154 = vector.load %arg18[%c0_90, %c0_91] : memref<1x1xf32, #tpu.memory_space<vmem>>, vector<1x1xf32>
      tpu.vector_store %arg18[%c0_90, %c0_91], %125 {strides = array<i32>} : memref<1x1xf32, #tpu.memory_space<vmem>>, vector<1x1xf32>,
      %c0_92 = arith.constant 0 : index
      %c0_93 = arith.constant 0 : index
      %155 = vector.load %arg19[%c0_92, %c0_93] : memref<1x1xf32, #tpu.memory_space<vmem>>, vector<1x1xf32>
      tpu.vector_store %arg19[%c0_92, %c0_93], %135 {strides = array<i32>} : memref<1x1xf32, #tpu.memory_space<vmem>>, vector<1x1xf32>,
      %c0_94 = arith.constant 0 : index
      %c0_95 = arith.constant 0 : index
      %156 = vector.load %arg20[%c0_94, %c0_95] : memref<1x1xf32, #tpu.memory_space<vmem>>, vector<1x1xf32>
      tpu.vector_store %arg20[%c0_94, %c0_95], %150 {strides = array<i32>} : memref<1x1xf32, #tpu.memory_space<vmem>>, vector<1x1xf32>,
    } else {
    }
    return
  }
  func.func @transform_0(%arg0: i32, %arg1: i32) -> (i32, i32, i32) {
    %c0_i32 = arith.constant 0 : i32
    %c0_i32_0 = arith.constant 0 : i32
    return %arg0, %c0_i32, %arg1 : i32, i32, i32
  }
  func.func @transform_1(%arg0: i32, %arg1: i32) -> (i32, i32) {
    %c0_i32 = arith.constant 0 : i32
    %c0_i32_0 = arith.constant 0 : i32
    %c0_i32_1 = arith.constant 0 : i32
    return %c0_i32, %c0_i32_0 : i32, i32
  }
  func.func @transform_2(%arg0: i32, %arg1: i32) -> (i32, i32) {
    %c0_i32 = arith.constant 0 : i32
    %c0_i32_0 = arith.constant 0 : i32
    %c0_i32_1 = arith.constant 0 : i32
    return %c0_i32, %c0_i32_0 : i32, i32
  }
  func.func @transform_3(%arg0: i32, %arg1: i32) -> (i32, i32) {
    %c0_i32 = arith.constant 0 : i32
    %c0_i32_0 = arith.constant 0 : i32
    %c0_i32_1 = arith.constant 0 : i32
    return %c0_i32, %c0_i32_0 : i32, i32
  }
  func.func @transform_4(%arg0: i32, %arg1: i32) -> (i32, i32) {
    %c0_i32 = arith.constant 0 : i32
    %c0_i32_0 = arith.constant 0 : i32
    %c0_i32_1 = arith.constant 0 : i32
    return %c0_i32, %c0_i32_0 : i32, i32
  }
  func.func @transform_5(%arg0: i32, %arg1: i32) -> (i32, i32) {
    %c0_i32 = arith.constant 0 : i32
    %c0_i32_0 = arith.constant 0 : i32
    %c0_i32_1 = arith.constant 0 : i32
    return %c0_i32, %c0_i32_0 : i32, i32
  }
  func.func @transform_6(%arg0: i32, %arg1: i32) -> (i32, i32) {
    %c0_i32 = arith.constant 0 : i32
    %c0_i32_0 = arith.constant 0 : i32
    %c0_i32_1 = arith.constant 0 : i32
    return %c0_i32, %c0_i32_0 : i32, i32
  }
  func.func @transform_7(%arg0: i32, %arg1: i32) -> (i32, i32) {
    %c0_i32 = arith.constant 0 : i32
    %c0_i32_0 = arith.constant 0 : i32
    %c0_i32_1 = arith.constant 0 : i32
    return %c0_i32, %c0_i32_0 : i32, i32
  }
  func.func @transform_8(%arg0: i32, %arg1: i32) -> (i32, i32) {
    %c0_i32 = arith.constant 0 : i32
    %c0_i32_0 = arith.constant 0 : i32
    %c0_i32_1 = arith.constant 0 : i32
    return %c0_i32, %c0_i32_0 : i32, i32
  }
  func.func @transform_9(%arg0: i32, %arg1: i32) -> (i32, i32) {
    %c0_i32 = arith.constant 0 : i32
    %c0_i32_0 = arith.constant 0 : i32
    %c0_i32_1 = arith.constant 0 : i32
    return %c0_i32, %c0_i32_0 : i32, i32
  }
  func.func @transform_10(%arg0: i32, %arg1: i32) -> (i32, i32) {
    %c0_i32 = arith.constant 0 : i32
    %c0_i32_0 = arith.constant 0 : i32
    %c0_i32_1 = arith.constant 0 : i32
    return %c0_i32, %c0_i32_0 : i32, i32
  }
  func.func @transform_11(%arg0: i32, %arg1: i32) -> (i32, i32) {
    %c0_i32 = arith.constant 0 : i32
    %c0_i32_0 = arith.constant 0 : i32
    %c0_i32_1 = arith.constant 0 : i32
    return %c0_i32, %c0_i32_0 : i32, i32
  }
  func.func @transform_12(%arg0: i32, %arg1: i32) -> (i32, i32) {
    %c0_i32 = arith.constant 0 : i32
    %c0_i32_0 = arith.constant 0 : i32
    %c0_i32_1 = arith.constant 0 : i32
    return %c0_i32, %c0_i32_0 : i32, i32
  }
  func.func @transform_13(%arg0: i32, %arg1: i32) -> (i32, i32, i32) {
    %c0_i32 = arith.constant 0 : i32
    %c0_i32_0 = arith.constant 0 : i32
    return %arg0, %c0_i32, %arg1 : i32, i32, i32
  }
  func.func @transform_14(%arg0: i32, %arg1: i32) -> (i32, i32) {
    %c0_i32 = arith.constant 0 : i32
    %c0_i32_0 = arith.constant 0 : i32
    %c0_i32_1 = arith.constant 0 : i32
    return %c0_i32, %c0_i32_0 : i32, i32
  }
  func.func @transform_15(%arg0: i32, %arg1: i32) -> (i32, i32) {
    %c0_i32 = arith.constant 0 : i32
    %c0_i32_0 = arith.constant 0 : i32
    %c0_i32_1 = arith.constant 0 : i32
    return %c0_i32, %c0_i32_0 : i32, i32
  }
  func.func @transform_16(%arg0: i32, %arg1: i32) -> (i32, i32) {
    %c0_i32 = arith.constant 0 : i32
    %c0_i32_0 = arith.constant 0 : i32
    %c0_i32_1 = arith.constant 0 : i32
    return %c0_i32, %c0_i32_0 : i32, i32
  }
  func.func @transform_17(%arg0: i32, %arg1: i32) -> (i32, i32) {
    %c0_i32 = arith.constant 0 : i32
    %c0_i32_0 = arith.constant 0 : i32
    %c0_i32_1 = arith.constant 0 : i32
    return %c0_i32, %c0_i32_0 : i32, i32
  }
  func.func @transform_18(%arg0: i32, %arg1: i32) -> (i32, i32) {
    %c0_i32 = arith.constant 0 : i32
    %c0_i32_0 = arith.constant 0 : i32
    %c0_i32_1 = arith.constant 0 : i32
    return %c0_i32, %c0_i32_0 : i32, i32
  }
}

</mosaic_0001>

<bundles_post_ra>
// kernel: sqvae_forward.1
= control target key start
LH: loop header
LB: loop body
LE: loop exit
PB: predicated region body
PF: predicated region fallthrough
CT: control target
= control target key end

     0   :  { %s3478_s0 = inlined_call_operand.vmem [shape: f32[2,4,256], index: 0, kind: input, shape index: {}]   ;;  %s3479_s1 = inlined_call_operand.vmem [shape: f32[32,4], index: 1, kind: input, shape index: {}]   ;;  %s3480_s2 = inlined_call_operand.vmem [shape: f32[32,1], index: 2, kind: input, shape index: {}]   ;;  %s3481_s3 = inlined_call_operand.vmem [shape: f32[32,32], index: 3, kind: input, shape index: {}]   ;;  %s3482_s4 = inlined_call_operand.vmem [shape: f32[32,1], index: 4, kind: input, shape index: {}]   ;;  %s3483_s5 = inlined_call_operand.vmem [shape: f32[64,32], index: 5, kind: input, shape index: {}]   ;;  %s3484_s6 = inlined_call_operand.vmem [shape: f32[32,64], index: 6, kind: input, shape index: {}]   ;;  %s3485_s7 = inlined_call_operand.vmem [shape: f32[64,1], index: 7, kind: input, shape index: {}]   ;;  %s3486_s8 = inlined_call_operand.<no memory space> [shape: f32[1,1], index: 8, kind: input, shape index: {}]   ;;  %s3487_s9 = inlined_call_operand.vmem [shape: f32[32,32], index: 9, kind: input, shape index: {}]   ;;  %s3488_s10 = inlined_call_operand.vmem [shape: f32[32,1], index: 10, kind: input, shape index: {}]   ;;  %s3489_s11 = inlined_call_operand.vmem [shape: f32[4,32], index: 11, kind: input, shape index: {}]   ;;  %s3490_s12 = inlined_call_operand.vmem [shape: f32[4,1], index: 12, kind: input, shape index: {}]   ;;  %s3491_s13 = inlined_call_operand.vmem [shape: f32[2,4,256], index: 13, kind: output, shape index: {0}]   ;;  %s3492_s14 = inlined_call_operand.hbm [shape: f32[1,1], index: 14, kind: output, shape index: {1}]   ;;  %s3493_s15 = inlined_call_operand.hbm [shape: f32[1,1], index: 15, kind: output, shape index: {2}]   ;;  %s3494_s16 = inlined_call_operand.hbm [shape: f32[1,1], index: 16, kind: output, shape index: {3}]   ;;  %s3495_s17 = inlined_call_operand.hbm [shape: f32[1,1], index: 17, kind: output, shape index: {4}]   ;;  %s3496_s18 = inlined_call_operand.hbm [shape: f32[1,1], index: 18, kind: output, shape index: {5}]  }
   0x1   :  { %3500 = sst [smem:[#allocation18_spill]] %s3478_s0  ;;  %v24_v0 = vstv %s3486_s8 }
   0x2   :  { %3501 = sst [smem:[#allocation19_spill]] %s3479_s1  ;;  %25 = vst [vmem:[#allocation6] sm:$0x1] %v24_v0 }
   0x3   :  { %3502 = sst [smem:[#allocation20_spill]] %s3480_s2 }
   0x4   :  { %3503 = sst [smem:[#allocation21_spill]] %s3482_s4 }
   0x5   :  { %26 = vsyncpa [#allocation8], 0 }
   0x6   :  { %27 = vsyncpa [#allocation10], 0 }
   0x7   :  { %28 = vsyncpa [#allocation13], 0  ;;  %s2693_s29 = smov 0   ;;  %s2695_s30 = smov 0  }
   0x8   :  { %s2697_s0 = smov 0  }
   0x9 LB: > { %s46_s19 = sadd.s32 1, %s2580_s30  ;;  %p2207_p1 = scmp.ge.s32.totalorder %s2584_s0, 1  ;;  %s2584_s0 = sphi %s2697_s0, %s34_s0   ;;  %s2580_s30 = sphi %s2695_s30, %s3513_s30   ;;  %s2576_s29 = sphi %s2693_s29, %s3512_s29  }
   0xa   : > { %p48_p0 = scmp.ge.s32.totalorder %s46_s19, 2  ;;  %p524_p2 = scmp.lt.s32.totalorder %s2584_s0, 3 }
   0xc   : > { %s3515_s19 = smov (%p48_p0, %s46_s19), 0  ;;  %p525_p3 = pnand %p2207_p1, %p524_p2 }
   0xd   : > { %p587_p4 = scmp.lt.s32.totalorder (!%p525_p3), %s2576_s29, 1  ;;  %p606_p5 = scmp.eq.s32.totalorder (!%p525_p3), %s2576_s29, 0 }
   0xe   : > { %528 = sbr.rel (%p525_p3) target bundleno = 1949 (0x79d), region = 72  ;;  %p610_p6 = scmp.eq.s32.totalorder (!%p525_p3), %s2576_s29, 1 }
   0xf   : > { %s3504_s2 = sld [smem:[#allocation18_spill]] (!%p525_p3) }
  0x13   : > { %s588_s1 = scalar_select %p587_p4, %s2576_s29, 1  ;;  %vm615_vm0 = vcmask (%p606_p5), 0   ;;  %vm619_vm1 = vcmask (%p606_p5), 7168   ;;  %v2586_v1 = vmov (%p606_p5), 0.0  }
  0x14   : > { %614 = sbr.rel (!%p606_p5) target bundleno = 26 (0x1a), region = 76  ;;  %616 = vst.msk [vmem:[#allocation2] sm:$0x1] (%p606_p5), %vm615_vm0, %v2586_v1  ;;  %617 = vst.msk [vmem:[#allocation3] sm:$0x1] (%p606_p5), %vm615_vm0, %v2586_v1 }
  0x15   : > { %s2285_s20 = sshll.u32 %s588_s1, 3  ;;  %618 = vst.msk [vmem:[#allocation4] sm:$0x1] (%p606_p5), %vm615_vm0, %v2586_v1 }
  0x16   : > { %s2721_s23 = scalar_lea.vmem %s3504_s2, %s2285_s20  ;;  %s2726_s26 = scalar_lea.vmem %s3491_s13, %s2285_s20  ;;  %620 = vst.msk [vmem:[#allocation5] sm:$0xff] (%p606_p5), %vm619_vm1, %v2586_v1  ;;  %621 = vst.msk [vmem:[#allocation5 + $0x8] sm:$0xff] (%p606_p5), %vm619_vm1, %v2586_v1 }
  0x17   : > { %622 = vst.msk [vmem:[#allocation5 + $0x10] sm:$0xff] (%p606_p5), %vm619_vm1, %v2586_v1  ;;  %623 = vst.msk [vmem:[#allocation5 + $0x18] sm:$0xff] (%p606_p5), %vm619_vm1, %v2586_v1 }
  0x18   : > { %624 = vst.msk [vmem:[#allocation5 + $0x20] sm:$0xff] (%p606_p5), %vm619_vm1, %v2586_v1  ;;  %625 = vst.msk [vmem:[#allocation5 + $0x28] sm:$0xff] (%p606_p5), %vm619_vm1, %v2586_v1 }
  0x19   : > { %626 = vst.msk [vmem:[#allocation5 + $0x30] sm:$0xff] %vm619_vm1, %v2586_v1  ;;  %627 = vst.msk [vmem:[#allocation5 + $0x38] sm:$0xff] %vm619_vm1, %v2586_v1 }
  0x1a PF: > { %v628_v2 = vld [vmem:[%s2721_s23] sm:$0xff]  ;;  %vm672_vm2 = vcmask 1043456   ;;  %v2587_v4 = vmov 0.0   ;;  %s3505_s1 = sld [smem:[#allocation20_spill]]  ;;  %vm659_vm3 = vcmask 31744   ;;  %v2588_v7 = vmov 0  }
  0x1b   : > { %v2729_v3 = vcombine.high %v628_v2, %v628_v2  ;;  %741 = vmatprep.mubr.f32.mxu0 %v2587_v4  ;;  %879 = vmatprep.mubr.f32.mxu1 %v2587_v4  ;;  %s3506_s22 = sld [smem:[#allocation19_spill]]  ;;  %v904_v10 = vld [vmem:[#allocation6] sm:$0x1]  ;;  %v1056_v22 = vlaneseq  ;;  %v1082_v28 = vld [vmem:[%s3485_s7 + $0x8] sm:$0xff]  ;;  %v1084_v31 = vld [vmem:[%s3485_s7 + $0x18] sm:$0xff]  ;;  %vm802_vm4 = vcmask 261120  }
  0x1c   : > { %2360 = vset.pattern.permute.xlu0 %v2588_v7  ;;  %2361 = vset.pattern.permute.xlu1 %v2588_v7  ;;  %v905_v12 = vmul.f32 1.442695, %v904_v10  ;;  %s3507_s4 = sld [smem:[#allocation21_spill]]  ;;  %v1081_v29 = vld [vmem:[%s3485_s7] sm:$0xff]  ;;  %v1083_v32 = vld [vmem:[%s3485_s7 + $0x10] sm:$0xff]  ;;  %v1086_v37 = vld [vmem:[%s3485_s7 + $0x28] sm:$0xff] }
  0x1d   : > { %2214 = vmatprep.subr.msk.mxu0 %vm672_vm2, %v2729_v3  ;;  %v2780_v23 = vshrl.u32 %v1056_v22, 7  ;;  %v1085_v38 = vld [vmem:[%s3485_s7 + $0x20] sm:$0xff]  ;;  %v1088_v41 = vld [vmem:[%s3485_s7 + $0x38] sm:$0xff]  ;;  %v1087_v42 = vld [vmem:[%s3485_s7 + $0x30] sm:$0xff] }
  0x1e   : > { %2215 = vmatpush1.msk.msra.mxu0 %vm672_vm2, %v628_v2  ;;  %2363 = vpow2.f32 %v905_v12  ;;  %v1558_v45 = vld [vmem:[%s3488_s10 + $0x10] sm:$0xff]  ;;  %v1559_v46 = vld [vmem:[%s3488_s10 + $0x18] sm:$0xff]  ;;  %v1556_v47 = vld [vmem:[%s3488_s10] sm:$0xff] }
  0x1f   : > { %v1058_v24 = vsub.s32 0, %v2780_v23  ;;  %v1557_v48 = vld [vmem:[%s3488_s10 + $0x8] sm:$0xff]  ;;  %v1690_v49 = vld [vmem:[%s3490_s12] sm:$0xf] }
  0x20   : > { %v636_v5 = vld [vmem:[%s3505_s1 + $0x18] sm:$0xff]  ;;  %v634_v8 = vld [vmem:[%s3505_s1 + $0x8] sm:$0xff]  ;;  %v635_v9 = vld [vmem:[%s3505_s1 + $0x10] sm:$0xff] }
  0x21   : > { %v629_v6 = vld [vmem:[%s3506_s22] sm:$0xff]  ;;  %654 = vperm.xlu0 %2360, %v636_v5   ;;  %644 = vperm.xlu1 %2361, %v634_v8   ;;  %v630_v13 = vld [vmem:[%s3506_s22 + $0x8] sm:$0xff]  ;;  %v631_v16 = vld [vmem:[%s3506_s22 + $0x10] sm:$0xff] }
  0x22   : > { %2216 = vmatmul.mubr.msk.f32.vlgmr.msra.gmra.mxu0 %vm659_vm3, %v629_v6  ;;  %v633_v11 = vld [vmem:[%s3505_s1] sm:$0xff]  ;;  %v781_v14 = vld [vmem:[%s3507_s4 + $0x18] sm:$0xff]  ;;  %v780_v15 = vld [vmem:[%s3507_s4 + $0x10] sm:$0xff] }
  0x23   : > { %747 = vmatprep.mubr.f32.mxu0 %v2587_v4  ;;  %v779_v17 = vld [vmem:[%s3507_s4 + $0x8] sm:$0xff]  ;;  %v778_v18 = vld [vmem:[%s3507_s4] sm:$0xff]  ;;  %v632_v19 = vld [vmem:[%s3506_s22 + $0x18] sm:$0xff] }
  0x25   : > { %649 = vperm.xlu0 %2360, %v635_v9   ;;  %639 = vperm.xlu1 %2361, %v633_v11  }
  0x26   : > { %2217 = vmatmul.mubr.msk.f32.gmra.mxu0 %vm659_vm3, %v630_v13 }
  0x27   : > { %753 = vmatprep.mubr.f32.mxu0 %v2587_v4 }
  0x29   : > { %799 = vperm.xlu0 %2360, %v781_v14   ;;  %794 = vperm.xlu1 %2361, %v780_v15  }
  0x2a   : > { %2218 = vmatmul.mubr.msk.f32.gmra.mxu0 %vm659_vm3, %v631_v16  ;;  %v774_v16 = vld [vmem:[%s3481_s3] sm:$0xff] }
  0x2b   : > { %759 = vmatprep.mubr.f32.mxu0 %v2587_v4  ;;  %v2364_v20 = vpop.eup %2363 }
  0x2c   : > { %v907_v21 = vmax.f32 %v2364_v20, 1e-10 }
  0x2d   : > { %789 = vperm.xlu0 %2360, %v779_v17   ;;  %784 = vperm.xlu1 %2361, %v778_v18   ;;  %v775_v17 = vld [vmem:[%s3481_s3 + $0x8] sm:$0xff]  ;;  %v776_v18 = vld [vmem:[%s3481_s3 + $0x10] sm:$0xff] }
  0x2e   : > { %2219 = vmatmul.mubr.msk.f32.gmra.mxu0 %vm659_vm3, %v632_v19  ;;  %2365 = vrcp.f32 %v907_v21  ;;  %v777_v19 = vld [vmem:[%s3481_s3 + $0x18] sm:$0xff] }
  0x2f   : > { %1006 = vmatprep.mubr.f32.mxu0 %v2587_v4 }
  0x3b   : > { %v2366_v25 = vpop.eup %2365 }
  0x3c   : > { %v1059_v26 = vrot.slane %v2366_v25, %v1058_v24  ;;  %v2783_v27 = vmul.f32 0.5, %v2366_v25 }
  0x3e   : > { %v1093_v30 = vrot.slane %v2783_v27, %v1058_v24  ;;  %1061 = vperm.xlu0 %2360, %v1059_v26  }
  0x40   : > { %v1096_v33 = vmul.f32 %v1093_v30, %v1082_v28  ;;  %v1095_v34 = vmul.f32 %v1093_v30, %v1081_v29  ;;  %v1098_v35 = vmul.f32 %v1093_v30, %v1084_v31  ;;  %v1097_v36 = vmul.f32 %v1093_v30, %v1083_v32 }
  0x41   : > { %v1100_v39 = vmul.f32 %v1093_v30, %v1086_v37  ;;  %v1099_v40 = vmul.f32 %v1093_v30, %v1085_v38  ;;  %v1102_v43 = vmul.f32 %v1093_v30, %v1088_v41  ;;  %v1101_v44 = vmul.f32 %v1093_v30, %v1087_v42  ;;  %v910_v42 = vld [vmem:[%s3483_s5] sm:$0xff] }
  0x42   : > { %1110 = vperm.xlu0 %2360, %v1096_v33   ;;  %1105 = vperm.xlu1 %2361, %v1095_v34  }
  0x46   : > { %1120 = vperm.xlu0 %2360, %v1098_v35   ;;  %1115 = vperm.xlu1 %2361, %v1097_v36  }
  0x4a   : > { %1130 = vperm.xlu0 %2360, %v1100_v39   ;;  %1125 = vperm.xlu1 %2361, %v1099_v40  }
  0x4e   : > { %1140 = vperm.xlu0 %2360, %v1102_v43   ;;  %1135 = vperm.xlu1 %2361, %v1101_v44   ;;  %v911_v43 = vld [vmem:[%s3483_s5 + $0x8] sm:$0xff]  ;;  %v912_v44 = vld [vmem:[%s3483_s5 + $0x10] sm:$0xff] }
  0x52   : > { %1572 = vperm.xlu0 %2360, %v1558_v45   ;;  %1577 = vperm.xlu1 %2361, %v1559_v46   ;;  %v913_v45 = vld [vmem:[%s3483_s5 + $0x18] sm:$0xff]  ;;  %v914_v46 = vld [vmem:[%s3483_s5 + $0x20] sm:$0xff] }
  0x56   : > { %1562 = vperm.xlu0 %2360, %v1556_v47   ;;  %1567 = vperm.xlu1 %2361, %v1557_v48   ;;  %v915_v47 = vld [vmem:[%s3483_s5 + $0x28] sm:$0xff]  ;;  %v916_v48 = vld [vmem:[%s3483_s5 + $0x30] sm:$0xff] }
  0x5a   : > { %1693 = vperm.xlu1 %2361, %v1690_v49   ;;  %v917_v49 = vld [vmem:[%s3483_s5 + $0x38] sm:$0xff] }
  0x9c   : > { %v655_v54 = vpop.permute.xlu0 %654  ;;  %v645_v57 = vpop.permute.xlu1 %644 }
  0xa0   : > { %v650_v59 = vpop.permute.xlu0 %649  ;;  %v640_v5 = vpop.permute.xlu1 %639 }
  0xa4   : > { %v800_v28 = vpop.permute.xlu0 %799  ;;  %v795_v30 = vpop.permute.xlu1 %794 }
  0xa8   : > { %v790_v35 = vpop.permute.xlu0 %789  ;;  %v785_v38 = vpop.permute.xlu1 %784 }
  0xe2   : > { %v743_v50 = vpop.f32.mrf.mxu0 }
  0xe3   : > { %v744_v10 = vadd.f32 %v743_v50, %v640_v5 }
  0xe4   : > { %v745_v51 = vpop.f32.mrf.mxu0 }
  0xe5   : > { %v746_v8 = vadd.f32 %v745_v51, %v640_v5  ;;  %v766_v15 = vmax.f32 %v744_v10, 0.0 }
  0xe6   : > { %v749_v52 = vpop.f32.mrf.mxu0 }
  0xe7   : > { %v750_v6 = vadd.f32 %v749_v52, %v645_v57  ;;  %v767_v14 = vmax.f32 %v746_v8, 0.0 }
  0xe8   : > { %v751_v53 = vpop.f32.mrf.mxu0 }
  0xe9   : > { %v752_v1 = vadd.f32 %v751_v53, %v645_v57  ;;  %v768_v13 = vmax.f32 %v750_v6, 0.0  ;;  %v1062_v53 = vpop.permute.xlu0 %1061 }
  0xea   : > { %v755_v55 = vpop.f32.mrf.mxu0 }
  0xeb   : > { %v756_v0 = vadd.f32 %v755_v55, %v650_v59  ;;  %v769_v12 = vmax.f32 %v752_v1, 0.0 }
  0xec   : > { %v757_v56 = vpop.f32.mrf.mxu0 }
  0xed   : > { %v758_v62 = vadd.f32 %v757_v56, %v650_v59  ;;  %v770_v11 = vmax.f32 %v756_v0, 0.0  ;;  %v1106_v56 = vpop.permute.xlu1 %1105 }
  0xee   : > { %v761_v58 = vpop.f32.mrf.mxu0 }
  0xef   : > { %v762_v60 = vadd.f32 %v761_v58, %v655_v54  ;;  %v771_v9 = vmax.f32 %v758_v62, 0.0  ;;  %v1111_v58 = vpop.permute.xlu0 %1110 }
  0xf0   : > { %v763_v61 = vpop.f32.mrf.mxu0 }
  0xf1   : > { %v764_v63 = vadd.f32 %v763_v61, %v655_v54  ;;  %v772_v7 = vmax.f32 %v762_v60, 0.0  ;;  %v1116_v61 = vpop.permute.xlu1 %1115 }
  0xf3   : > { %v773_v2 = vmax.f32 %v764_v63, 0.0  ;;  %v1121_v63 = vpop.permute.xlu0 %1120 }
  0xf5   : > { %839 = vmatprep.subr.mxu1 %v773_v2  ;;  %v1126_v6 = vpop.permute.xlu1 %1125 }
  0xf6   : > { %840 = vmatpush1.msra.mxu1 %v772_v7 }
  0xf7   : > { %841 = vmatprep.subr.mxu1 %v771_v9 }
  0xf8   : > { %842 = vmatpush1.msra.mxu1 %v770_v11 }
  0xf9   : > { %843 = vmatprep.subr.mxu1 %v769_v12 }
  0xfa   : > { %844 = vmatpush1.msra.mxu1 %v768_v13 }
  0xfb   : > { %845 = vmatprep.subr.mxu1 %v767_v14  ;;  %v1131_v14 = vpop.permute.xlu0 %1130 }
  0xfc   : > { %846 = vmatpush1.msra.mxu1 %v766_v15 }
  0xfd   : > { %2220 = vmatmul.mubr.msk.f32.vlgmr.msra.gmra.mxu1 %vm802_vm4, %v774_v16 }
  0xfe   : > { %885 = vmatprep.mubr.f32.mxu1 %v2587_v4 }
 0x101   : > { %2221 = vmatmul.mubr.msk.f32.gmra.mxu1 %vm802_vm4, %v775_v17 }
 0x102   : > { %891 = vmatprep.mubr.f32.mxu1 %v2587_v4 }
 0x105   : > { %2222 = vmatmul.mubr.msk.f32.gmra.mxu1 %vm802_vm4, %v776_v18 }
 0x106   : > { %897 = vmatprep.mubr.f32.mxu1 %v2587_v4 }
 0x109   : > { %2223 = vmatmul.mubr.msk.f32.gmra.mxu1 %vm802_vm4, %v777_v19 }
 0x10a   : > { %1527 = vmatprep.mubr.f32.mxu1 %v2587_v4 }
 0x1bd   : > { %v881_v20 = vpop.f32.mrf.mxu1 }
 0x1be   : > { %v2864_v41 = vadd.f32 %v881_v20, %v785_v38 }
 0x1bf   : > { %v883_v21 = vpop.f32.mrf.mxu1 }
 0x1c0   : > { %v2861_v40 = vadd.f32 %v883_v21, %v785_v38  ;;  %v1136_v38 = vpop.permute.xlu1 %1135 }
 0x1c1   : > { %v887_v22 = vpop.f32.mrf.mxu1 }
 0x1c2   : > { %v2858_v39 = vadd.f32 %v887_v22, %v790_v35 }
 0x1c3   : > { %v889_v24 = vpop.f32.mrf.mxu1 }
 0x1c4   : > { %v2855_v37 = vadd.f32 %v889_v24, %v790_v35 }
 0x1c5   : > { %v893_v25 = vpop.f32.mrf.mxu1 }
 0x1c6   : > { %v2852_v36 = vadd.f32 %v893_v25, %v795_v30 }
 0x1c7   : > { %v895_v26 = vpop.f32.mrf.mxu1 }
 0x1c8   : > { %v2849_v34 = vadd.f32 %v895_v26, %v795_v30 }
 0x1c9   : > { %v899_v29 = vpop.f32.mrf.mxu1 }
 0x1ca   : > { %v2847_v33 = vadd.f32 %v899_v29, %v800_v28 }
 0x1cb   : > { %v901_v31 = vpop.f32.mrf.mxu1 }
 0x1cc   : > { %v2845_v32 = vadd.f32 %v901_v31, %v800_v28 }
 0x1ce   : > { %966 = vmatprep.subr.mxu0 %v2845_v32 }
 0x1cf   : > { %967 = vmatpush1.msra.mxu0 %v2847_v33 }
 0x1d0   : > { %968 = vmatprep.subr.mxu0 %v2849_v34 }
 0x1d1   : > { %969 = vmatpush1.msra.mxu0 %v2852_v36 }
 0x1d2   : > { %970 = vmatprep.subr.mxu0 %v2855_v37 }
 0x1d3   : > { %971 = vmatpush1.msra.mxu0 %v2858_v39 }
 0x1d4   : > { %972 = vmatprep.subr.mxu0 %v2861_v40 }
 0x1d5   : > { %973 = vmatpush1.msra.mxu0 %v2864_v41 }
 0x1d6   : > { %2224 = vmatmul.mubr.msk.f32.vlgmr.msra.gmra.mxu0 %vm802_vm4, %v910_v42 }
 0x1d7   : > { %1012 = vmatprep.mubr.f32.mxu0 %v2587_v4 }
 0x1da   : > { %2225 = vmatmul.mubr.msk.f32.gmra.mxu0 %vm802_vm4, %v911_v43 }
 0x1db   : > { %1018 = vmatprep.mubr.f32.mxu0 %v2587_v4 }
 0x1de   : > { %2226 = vmatmul.mubr.msk.f32.gmra.mxu0 %vm802_vm4, %v912_v44 }
 0x1df   : > { %1024 = vmatprep.mubr.f32.mxu0 %v2587_v4 }
 0x1e2   : > { %2227 = vmatmul.mubr.msk.f32.gmra.mxu0 %vm802_vm4, %v913_v45 }
 0x1e3   : > { %1030 = vmatprep.mubr.f32.mxu0 %v2587_v4 }
 0x1e6   : > { %2228 = vmatmul.mubr.msk.f32.gmra.mxu0 %vm802_vm4, %v914_v46 }
 0x1e7   : > { %1036 = vmatprep.mubr.f32.mxu0 %v2587_v4 }
 0x1ea   : > { %2229 = vmatmul.mubr.msk.f32.gmra.mxu0 %vm802_vm4, %v915_v47 }
 0x1eb   : > { %1042 = vmatprep.mubr.f32.mxu0 %v2587_v4 }
 0x1ee   : > { %2230 = vmatmul.mubr.msk.f32.gmra.mxu0 %vm802_vm4, %v916_v48 }
 0x1ef   : > { %1048 = vmatprep.mubr.f32.mxu0 %v2587_v4 }
 0x1f2   : > { %2231 = vmatmul.mubr.msk.f32.gmra.mxu0 %vm802_vm4, %v917_v49 }
 0x1f3   : > { %1763 = vmatprep.mubr.f32.mxu0 %v2587_v4 }
 0x296   : > { %v1008_v50 = vpop.f32.mrf.mxu0 }
 0x297   : > { %v1064_v7 = vmul.f32 %v1062_v53, %v1008_v50 }
 0x298   : > { %v1010_v51 = vpop.f32.mrf.mxu0 }
 0x299   : > { %v1065_v15 = vmul.f32 %v1062_v53, %v1010_v51  ;;  %v2913_v24 = vsub.f32 %v1064_v7, %v1106_v56  ;;  %v1141_v51 = vpop.permute.xlu0 %1140 }
 0x29a   : > { %v1014_v52 = vpop.f32.mrf.mxu0 }
 0x29b   : > { %v1066_v12 = vmul.f32 %v1062_v53, %v1014_v52  ;;  %v2925_v42 = vsub.f32 %v1065_v15, %v1106_v56 }
 0x29c   : > { %v1016_v54 = vpop.f32.mrf.mxu0 }
 0x29d   : > { %v1067_v16 = vmul.f32 %v1062_v53, %v1016_v54  ;;  %v2921_v30 = vsub.f32 %v1066_v12, %v1111_v58 }
 0x29e   : > { %v1020_v55 = vpop.f32.mrf.mxu0 }
 0x29f   : > { %v1068_v1 = vmul.f32 %v1062_v53, %v1020_v55  ;;  %v2927_v43 = vsub.f32 %v1067_v16, %v1111_v58 }
 0x2a0   : > { %v1022_v57 = vpop.f32.mrf.mxu0 }
 0x2a1   : > { %v1069_v8 = vmul.f32 %v1062_v53, %v1022_v57  ;;  %v2909_v17 = vsub.f32 %v1068_v1, %v1116_v61 }
 0x2a2   : > { %v1026_v59 = vpop.f32.mrf.mxu0 }
 0x2a3   : > { %v1070_v5 = vmul.f32 %v1062_v53, %v1026_v59  ;;  %v2915_v25 = vsub.f32 %v1069_v8, %v1116_v61  ;;  %v1159_v44 = vmax.f32 %v2913_v24, %v2909_v17 }
 0x2a4   : > { %v1028_v60 = vpop.f32.mrf.mxu0 }
 0x2a5   : > { %v1071_v9 = vmul.f32 %v1062_v53, %v1028_v60  ;;  %v2911_v20 = vsub.f32 %v1070_v5, %v1121_v63  ;;  %v1172_v52 = vmax.f32 %v2925_v42, %v2915_v25 }
 0x2a6   : > { %v1032_v62 = vpop.f32.mrf.mxu0 }
 0x2a7   : > { %v1072_v10 = vmul.f32 %v1062_v53, %v1032_v62  ;;  %v2917_v26 = vsub.f32 %v1071_v9, %v1121_v63  ;;  %v1160_v47 = vmax.f32 %v2921_v30, %v2911_v20 }
 0x2a8   : > { %v1034_v0 = vpop.f32.mrf.mxu0 }
 0x2a9   : > { %v1073_v18 = vmul.f32 %v1062_v53, %v1034_v0  ;;  %v2919_v28 = vsub.f32 %v1072_v10, %v1126_v6  ;;  %v1173_v54 = vmax.f32 %v2927_v43, %v2917_v26 }
 0x2aa   : > { %v1038_v2 = vpop.f32.mrf.mxu0 }
 0x2ab   : > { %v1074_v13 = vmul.f32 %v1062_v53, %v1038_v2  ;;  %v2931_v45 = vsub.f32 %v1073_v18, %v1126_v6  ;;  %v1161_v55 = vmax.f32 %v1159_v44, %v2919_v28 }
 0x2ac   : > { %v1040_v11 = vpop.f32.mrf.mxu0 }
 0x2ad   : > { %v1075_v21 = vmul.f32 %v1062_v53, %v1040_v11  ;;  %v2923_v31 = vsub.f32 %v1074_v13, %v1131_v14  ;;  %v1174_v61 = vmax.f32 %v1172_v52, %v2931_v45  ;;  %v2994_v52 = vadd.s32 48, %v2780_v23 }
 0x2ae   : > { %v1044_v19 = vpop.f32.mrf.mxu0 }
 0x2af   : > { %v1076_v22 = vmul.f32 %v1062_v53, %v1044_v19  ;;  %v2935_v48 = vsub.f32 %v1075_v21, %v1131_v14  ;;  %v1162_v57 = vmax.f32 %v1160_v47, %v2923_v31 }
 0x2b0   : > { %v1046_v29 = vpop.f32.mrf.mxu0 }
 0x2b1   : > { %v1077_v35 = vmul.f32 %v1062_v53, %v1046_v29  ;;  %v2937_v49 = vsub.f32 %v1076_v22, %v1136_v38  ;;  %v1175_v62 = vmax.f32 %v1173_v54, %v2935_v48  ;;  %v2976_v22 = vadd.s32 8, %v2780_v23 }
 0x2b2   : > { %v1050_v46 = vpop.f32.mrf.mxu0  ;;  %v2979_v29 = vadd.s32 16, %v2780_v23 }
 0x2b3   : > { %v1078_v50 = vmul.f32 %v1062_v53, %v1050_v46  ;;  %v2945_v58 = vsub.f32 %v1077_v35, %v1136_v38  ;;  %v1163_v63 = vmax.f32 %v1161_v55, %v2937_v49  ;;  %v2982_v35 = vadd.s32 24, %v2780_v23 }
 0x2b4   : > { %v1052_v56 = vpop.f32.mrf.mxu0  ;;  %v2987_v46 = vadd.s32 32, %v2780_v23 }
 0x2b5   : > { %v2947_v59 = vsub.f32 %v1078_v50, %v1141_v51  ;;  %v1079_v60 = vmul.f32 %v1062_v53, %v1052_v56  ;;  %v1176_v2 = vmax.f32 %v1174_v61, %v2945_v58  ;;  %v3008_v56 = vadd.s32 56, %v2780_v23 }
 0x2b7   : > { %v1164_v0 = vmax.f32 %v1162_v57, %v2947_v59  ;;  %v2953_v1 = vsub.f32 %v1079_v60, %v1141_v51  ;;  %v2991_v51 = vadd.s32 40, %v2780_v23 }
 0x2b9   : > { %v1165_v5 = vmax.f32 %v1163_v63, %v1164_v0  ;;  %v1177_v6 = vmax.f32 %v1175_v62, %v2953_v1 }
 0x2bb   : > { %v1166_v7 = vrot.slane %v1165_v5, 4  ;;  %v1178_v8 = vmax.f32 %v1176_v2, %v1177_v6 }
 0x2bd   : > { %v1167_v9 = vmax.f32 %v1165_v5, %v1166_v7  ;;  %v1179_v10 = vrot.slane %v1178_v8, 4 }
 0x2bf   : > { %v1168_v53 = vrot.slane %v1167_v9, 2  ;;  %v1180_v12 = vmax.f32 %v1178_v8, %v1179_v10 }
 0x2c1   : > { %v1169_v11 = vmax.f32 %v1167_v9, %v1168_v53  ;;  %v1181_v15 = vrot.slane %v1180_v12, 2 }
 0x2c3   : > { %v1170_v13 = vrot.slane %v1169_v11, 1  ;;  %v1182_v47 = vmax.f32 %v1180_v12, %v1181_v15 }
 0x2c5   : > { %v2957_v14 = vmax.f32 %v1169_v11, %v1170_v13 }
 0x2c7   : > { %v2961_v16 = vsub.f32 %v2913_v24, %v2957_v14  ;;  %v2965_v18 = vsub.f32 %v2921_v30, %v2957_v14  ;;  %v2969_v19 = vsub.f32 %v2909_v17, %v2957_v14  ;;  %v2973_v21 = vsub.f32 %v2911_v20, %v2957_v14 }
 0x2c8   : > { %vm1320_vm5 = vcmp.ge.f32.partialorder %v2913_v24, %v2957_v14  ;;  %v3000_v54 = vsub.f32 %v2919_v28, %v2957_v14  ;;  %vm1322_vm6 = vcmp.ge.f32.partialorder %v2921_v30, %v2957_v14  ;;  %vm1324_vm7 = vcmp.ge.f32.partialorder %v2909_v17, %v2957_v14 }
 0x2c9   : > { %v1201_v38 = vmul.f32 1.442695, %v2961_v16  ;;  %v1205_v44 = vmul.f32 1.442695, %v2965_v18  ;;  %v1209_v50 = vmul.f32 1.442695, %v2969_v19  ;;  %vm1326_vm8 = vcmp.ge.f32.partialorder %v2911_v20, %v2957_v14 }
 0x2ca   : > { %v1213_v55 = vmul.f32 1.442695, %v2973_v21  ;;  %vm1328_vm9 = vcmp.ge.f32.partialorder %v2919_v28, %v2957_v14  ;;  %vm1330_vm10 = vcmp.ge.f32.partialorder %v2923_v31, %v2957_v14  ;;  %v1336_v24 = vsel %vm1320_vm5, %v2780_v23, 64 }
 0x2cb   : > { %2367 = vpow2.f32 %v1201_v38  ;;  %v1183_v30 = vrot.slane %v1182_v47, 1  ;;  %v1338_v17 = vsel %vm1322_vm6, %v2976_v22, 64  ;;  %v1340_v57 = vsel %vm1324_vm7, %v2979_v29, 64 }
 0x2cc   : > { %2369 = vpow2.f32 %v1205_v44  ;;  %v1342_v60 = vsel %vm1326_vm8, %v2982_v35, 64  ;;  %v3022_v61 = vsub.f32 %v2923_v31, %v2957_v14  ;;  %v1217_v20 = vmul.f32 1.442695, %v3000_v54 }
 0x2cd   : > { %2371 = vpow2.f32 %v1209_v50  ;;  %vm1332_vm11 = vcmp.ge.f32.partialorder %v2937_v49, %v2957_v14  ;;  %vm1334_vm12 = vcmp.ge.f32.partialorder %v2947_v59, %v2957_v14  ;;  %v1344_v28 = vsel %vm1328_vm9, %v2987_v46, 64 }
 0x2ce   : > { %2373 = vpow2.f32 %v1213_v55  ;;  %vm1352_vm13 = vcmp.lt.s32.totalorder %v1336_v24, %v1340_v57  ;;  %vm1354_vm14 = vcmp.lt.s32.totalorder %v1338_v17, %v1342_v60  ;;  %v1346_v62 = vsel %vm1330_vm10, %v2991_v51, 64 }
 0x2cf   : > { %v1353_v63 = vsel %vm1352_vm13, %v1336_v24, %v1340_v57  ;;  %v1355_v0 = vsel %vm1354_vm14, %v1338_v17, %v1342_v60  ;;  %v3031_v2 = vmax.f32 %v1182_v47, %v1183_v30  ;;  %v1348_v31 = vsel %vm1332_vm11, %v2994_v52, 64 }
 0x2d0   : > { %v1350_v5 = vsel %vm1334_vm12, %v3008_v56, 64  ;;  %vm1356_vm15 = vcmp.lt.s32.totalorder %v1353_v63, %v1344_v28  ;;  %vm1358_vm0 = vcmp.lt.s32.totalorder %v1355_v0, %v1346_v62  ;;  %v3053_v11 = vsub.f32 %v2937_v49, %v2957_v14 }
 0x2d1   : > { %v1357_v6 = vsel %vm1356_vm15, %v1353_v63, %v1344_v28  ;;  %v1359_v7 = vsel %vm1358_vm0, %v1355_v0, %v1346_v62  ;;  %v3037_v8 = vsub.f32 %v2925_v42, %v3031_v2  ;;  %v3041_v9 = vsub.f32 %v2927_v43, %v3031_v2 }
 0x2d2   : > { %vm1360_vm1 = vcmp.lt.s32.totalorder %v1357_v6, %v1348_v31  ;;  %vm1362_vm3 = vcmp.lt.s32.totalorder %v1359_v7, %v1350_v5  ;;  %v3045_v10 = vsub.f32 %v2915_v25, %v3031_v2  ;;  %v3049_v53 = vsub.f32 %v2917_v26, %v3031_v2 }
 0x2d3   : > { %v1361_v12 = vsel %vm1360_vm1, %v1357_v6, %v1348_v31  ;;  %v1363_v13 = vsel %vm1362_vm3, %v1359_v7, %v1350_v5  ;;  %2375 = vpow2.f32 %v1217_v20  ;;  %v3057_v15 = vsub.f32 %v2931_v45, %v3031_v2 }
 0x2d4   : > { %vm1364_vm5 = vcmp.lt.s32.totalorder %v1361_v12, %v1363_v13  ;;  %v1203_v38 = vmul.f32 1.442695, %v3037_v8  ;;  %v1207_v47 = vmul.f32 1.442695, %v3041_v9  ;;  %v1211_v50 = vmul.f32 1.442695, %v3045_v10 }
 0x2d5   : > { %v1365_v44 = vsel %vm1364_vm5, %v1361_v12, %v1363_v13  ;;  %v1215_v55 = vmul.f32 1.442695, %v3049_v53  ;;  %v3067_v49 = vsub.f32 %v2947_v59, %v2957_v14  ;;  %v1221_v30 = vmul.f32 1.442695, %v3022_v61 }
 0x2d6   : > { %v1366_v17 = vrot.slane %v1365_v44, 4  ;;  %2377 = vpow2.f32 %v1203_v38  ;;  %v1225_v60 = vmul.f32 1.442695, %v3053_v11  ;;  %v3077_v28 = vsub.f32 %v2935_v48, %v3031_v2 }
 0x2d7   : > { %2379 = vpow2.f32 %v1207_v47  ;;  %v3083_v14 = vsub.f32 %v2945_v58, %v3031_v2  ;;  %v1219_v63 = vmul.f32 1.442695, %v3057_v15  ;;  %vm1321_vm7 = vcmp.ge.f32.partialorder %v2925_v42, %v3031_v2 }
 0x2d8   : > { %v3063_v24 = vpop.eup %2367  ;;  %vm1367_vm6 = vcmp.lt.s32.totalorder %v1365_v44, %v1366_v17  ;;  %2381 = vpow2.f32 %v1211_v50  ;;  %v1223_v6 = vmul.f32 1.442695, %v3077_v28  ;;  %vm1323_vm8 = vcmp.ge.f32.partialorder %v2927_v43, %v3031_v2 }
 0x2d9   : > { %v3070_v57 = vpop.eup %2369  ;;  %v1259_v20 = vmul.f32 %v3063_v24, %v2961_v16  ;;  %2383 = vpow2.f32 %v1215_v55  ;;  %v1229_v16 = vmul.f32 1.442695, %v3067_v49  ;;  %v1368_v31 = vsel %vm1367_vm6, %v1365_v44, %v1366_v17 }
 0x2da   : > { %v1261_v59 = vmul.f32 %v3070_v57, %v2965_v18  ;;  %v3085_v62 = vpop.eup %2371  ;;  %2385 = vpow2.f32 %v1221_v30  ;;  %v3093_v18 = vsub.f32 %v2953_v1, %v3031_v2  ;;  %v1227_v12 = vmul.f32 1.442695, %v3083_v14 }
 0x2db   : > { %v3089_v5 = vpop.eup %2373  ;;  %2387 = vpow2.f32 %v1225_v60  ;;  %v1263_v7 = vmul.f32 %v3085_v62, %v2969_v19  ;;  %v1369_v13 = vrot.slane %v1368_v31, 2  ;;  %vm1325_vm9 = vcmp.ge.f32.partialorder %v2915_v25, %v3031_v2 }
 0x2dc   : > { %v1275_v0 = vadd.f32 %v1261_v59, %v1259_v20  ;;  %2389 = vpow2.f32 %v1219_v63  ;;  %vm1327_vm10 = vcmp.ge.f32.partialorder %v2917_v26, %v3031_v2  ;;  %v1265_v19 = vmul.f32 %v3089_v5, %v2973_v21 }
 0x2dd   : > { %2391 = vpow2.f32 %v1229_v16  ;;  %v1337_v44 = vsel %vm1321_vm7, %v2780_v23, 64  ;;  %v1339_v42 = vsel %vm1323_vm8, %v2976_v22, 64  ;;  %vm1329_vm11 = vcmp.ge.f32.partialorder %v2931_v45, %v3031_v2 }
 0x2de   : > { %v1276_v38 = vadd.f32 %v1275_v0, %v1263_v7  ;;  %2393 = vpow2.f32 %v1223_v6  ;;  %vm1331_vm12 = vcmp.ge.f32.partialorder %v2935_v48, %v3031_v2  ;;  %v1341_v25 = vsel %vm1325_vm9, %v2979_v29, 64 }
 0x2df   : > { %v1343_v26 = vsel %vm1327_vm10, %v2982_v35, 64  ;;  %vm3119_vm13 = vcmp.lt.s32.totalorder %v1368_v31, %v1369_v13  ;;  %2395 = vpow2.f32 %v1227_v12  ;;  %v1231_v21 = vmul.f32 1.442695, %v3093_v18 }
 0x2e0   : > { %v3117_v43 = vpop.eup %2375  ;;  %vm1333_vm14 = vcmp.ge.f32.partialorder %v2945_v58, %v3031_v2  ;;  %v1277_v45 = vadd.f32 %v1276_v38, %v1265_v19  ;;  %vm1335_vm15 = vcmp.ge.f32.partialorder %v2953_v1, %v3031_v2  ;;  %vm1375_vm0 = vcmp.lt.s32.totalorder %v1337_v44, %v1341_v25 }
 0x2e1   : > { %vm1377_vm1 = vcmp.lt.s32.totalorder %v1339_v42, %v1343_v26  ;;  %v1345_v50 = vsel %vm1329_vm11, %v2987_v46, 64  ;;  %v1347_v55 = vsel %vm1331_vm12, %v2991_v51, 64  ;;  %v1376_v30 = vsel %vm1375_vm0, %v1337_v44, %v1341_v25 }
 0x2e2   : > { %v1378_v17 = vsel %vm1377_vm1, %v1339_v42, %v1343_v26  ;;  %v1349_v59 = vsel %vm1333_vm14, %v2994_v52, 64  ;;  %vm1379_vm3 = vcmp.lt.s32.totalorder %v1376_v30, %v1345_v50  ;;  %v1351_v1 = vsel %vm1335_vm15, %v3008_v56, 64 }
 0x2e3   : > { %v2378_v48 = vpop.eup %2377  ;;  %vm1381_vm5 = vcmp.lt.s32.totalorder %v1378_v17, %v1347_v55  ;;  %v1380_v2 = vsel %vm1379_vm3, %v1376_v30, %v1345_v50  ;;  %v1267_v6 = vmul.f32 %v3117_v43, %v3000_v54  ;;  %2397 = vpow2.f32 %v1231_v21 }
 0x2e4   : > { %v2380_v60 = vpop.eup %2379  ;;  %v1260_v20 = vmul.f32 %v2378_v48, %v3037_v8  ;;  %v1382_v16 = vsel %vm1381_vm5, %v1378_v17, %v1347_v55  ;;  %vm1383_vm6 = vcmp.lt.s32.totalorder %v1380_v2, %v1349_v59 }
 0x2e5   : > { %v2382_v58 = vpop.eup %2381  ;;  %v1262_v63 = vmul.f32 %v2380_v60, %v3041_v9  ;;  %vm1385_vm7 = vcmp.lt.s32.totalorder %v1382_v16, %v1351_v1  ;;  %v1384_v38 = vsel %vm1383_vm6, %v1380_v2, %v1349_v59  ;;  %v1371_v9 = vsel %vm3119_vm13, %v1368_v31, %v1369_v13 }
 0x2e6   : > { %v2384_v0 = vpop.eup %2383  ;;  %v1264_v8 = vmul.f32 %v2382_v58, %v3045_v10  ;;  %v1386_v19 = vsel %vm1385_vm7, %v1382_v16, %v1351_v1  ;;  %v1278_v42 = vadd.f32 %v1277_v45, %v1267_v6  ;;  %v1246_v31 = vadd.f32 %v2380_v60, %v2378_v48 }
 0x2e7   : > { %v2386_v7 = vpop.eup %2385  ;;  %v1288_v12 = vadd.f32 %v1262_v63, %v1260_v20  ;;  %vm1387_vm8 = vcmp.lt.s32.totalorder %v1384_v38, %v1386_v19  ;;  %v1266_v25 = vmul.f32 %v2384_v0, %v3049_v53  ;;  %v1233_v20 = vadd.f32 %v3070_v57, %v3063_v24 }
 0x2e8   : > { %v2388_v44 = vpop.eup %2387  ;;  %v1388_v50 = vsel %vm1387_vm8, %v1384_v38, %v1386_v19  ;;  %v1269_v17 = vmul.f32 %v2386_v7, %v3022_v61  ;;  %v1372_v63 = vrot.slane %v1371_v9, 1  ;;  %v1247_v2 = vadd.f32 %v2382_v58, %v1246_v31 }
 0x2e9   : > { %v1289_v26 = vadd.f32 %v1288_v12, %v1264_v8  ;;  %v2390_v54 = vpop.eup %2389  ;;  %v1389_v55 = vrot.slane %v1388_v50, 4  ;;  %v1234_v53 = vadd.f32 %v3085_v62, %v1233_v20  ;;  %v1271_v16 = vmul.f32 %v2388_v44, %v3053_v11 }
 0x2ea   : > { %v2392_v30 = vpop.eup %2391  ;;  %v1279_v13 = vadd.f32 %v1278_v42, %v1269_v17  ;;  %v1268_v47 = vmul.f32 %v2390_v54, %v3057_v15  ;;  %vm1373_vm10 = vcmp.lt.s32.totalorder %v1371_v9, %v1372_v63  ;;  %v1248_v24 = vadd.f32 %v2384_v0, %v1247_v2 }
 0x2eb   : > { %v1290_v10 = vadd.f32 %v1289_v26, %v1266_v25  ;;  %v2394_v59 = vpop.eup %2393  ;;  %vm1390_vm9 = vcmp.lt.s32.totalorder %v1388_v50, %v1389_v55  ;;  %v1235_v6 = vadd.f32 %v3089_v5, %v1234_v53  ;;  %v1273_v62 = vmul.f32 %v2392_v30, %v3067_v49 }
 0x2ec   : > { %v1391_v21 = vsel %vm1390_vm9, %v1388_v50, %v1389_v55  ;;  %v2396_v45 = vpop.eup %2395  ;;  %v1280_v57 = vadd.f32 %v1279_v13, %v1271_v16  ;;  %v1270_v48 = vmul.f32 %v2394_v59, %v3077_v28  ;;  %v1249_v12 = vadd.f32 %v2390_v54, %v1248_v24 }
 0x2ed   : > { %v1392_v1 = vrot.slane %v1391_v21, 2  ;;  %v1291_v61 = vadd.f32 %v1290_v10, %v1268_v47  ;;  %v1236_v15 = vadd.f32 %v3117_v43, %v1235_v6  ;;  %v3150_v38 = vsel %vm1373_vm10, %v1371_v9, %v1372_v63 }
 0x2ee   : > { %v1250_v19 = vadd.f32 %v2394_v59, %v1249_v12  ;;  %v1281_v42 = vadd.f32 %v1280_v57, %v1273_v62  ;;  %v1272_v0 = vmul.f32 %v2396_v45, %v3083_v14  ;;  %vm1412_vm14 = vcmp.eq.s32.totalorder %v3008_v56, %v3150_v38  ;;  %v1447_v12 = vld [vmem:[%s3484_s6 + $0x8] sm:$0xff] }
 0x2ef   : > { %vm1393_vm11 = vcmp.lt.s32.totalorder %v1391_v21, %v1392_v1  ;;  %v1292_v58 = vadd.f32 %v1291_v61, %v1270_v48  ;;  %v1237_v11 = vadd.f32 %v2386_v7, %v1236_v15  ;;  %vm1410_vm15 = vcmp.eq.s32.totalorder %v2994_v52, %v3150_v38 }
 0x2f0   : > { %v1394_v60 = vsel %vm1393_vm11, %v1391_v21, %v1392_v1  ;;  %v2398_v5 = vpop.eup %2397  ;;  %vm1398_vm0 = vcmp.eq.s32.totalorder %v2780_v23, %v3150_v38  ;;  %v2589_v43 = vmov 1.0   ;;  %vm1406_vm3 = vcmp.eq.s32.totalorder %v2987_v46, %v3150_v38 }
 0x2f1   : > { %v1395_v8 = vrot.slane %v1394_v60, 1  ;;  %v1238_v28 = vadd.f32 %v2388_v44, %v1237_v11  ;;  %v1293_v49 = vadd.f32 %v1292_v58, %v1272_v0  ;;  %vm1402_vm5 = vcmp.eq.s32.totalorder %v2979_v29, %v3150_v38 }
 0x2f2   : > { %v1251_v7 = vadd.f32 %v2396_v45, %v1250_v19  ;;  %v1282_v44 = vrot.slane %v1281_v42, 4  ;;  %v1274_v9 = vmul.f32 %v2398_v5, %v3093_v18  ;;  %vm1408_vm8 = vcmp.eq.s32.totalorder %v2991_v51, %v3150_v38 }
 0x2f3   : > { %vm1396_vm12 = vcmp.lt.s32.totalorder %v1394_v60, %v1395_v8  ;;  %v1239_v14 = vadd.f32 %v2392_v30, %v1238_v28  ;;  %v2232_v26 = vsel %vm1398_vm0, 1.0, %v2587_v4  ;;  %v2236_v55 = vsel %vm1402_vm5, 1.0, %v2587_v4 }
 0x2f4   : > { %v3153_v25 = vsel %vm1396_vm12, %v1394_v60, %v1395_v8  ;;  %v1252_v50 = vadd.f32 %v2398_v5, %v1251_v7  ;;  %v2240_v17 = vsel %vm1406_vm3, 1.0, %v2587_v4  ;;  %v1294_v10 = vadd.f32 %v1293_v49, %v1274_v9  ;;  %v1449_v5 = vld [vmem:[%s3484_s6 + $0x18] sm:$0xff] }
 0x2f5   : > { %vm1413_vm13 = vcmp.eq.s32.totalorder %v3008_v56, %v3153_v25  ;;  %vm1411_vm1 = vcmp.eq.s32.totalorder %v2994_v52, %v3153_v25  ;;  %vm1403_vm6 = vcmp.eq.s32.totalorder %v2979_v29, %v3153_v25  ;;  %vm1399_vm7 = vcmp.eq.s32.totalorder %v2780_v23, %v3153_v25  ;;  %v1446_v29 = vld [vmem:[%s3484_s6] sm:$0xff]  ;;  %v1448_v23 = vld [vmem:[%s3484_s6 + $0x10] sm:$0xff] }
 0x2f6   : > { %2248 = vmatprep.subr.msk.mxu1 %vm1413_vm13, %v2589_v43  ;;  %vm1409_vm9 = vcmp.eq.s32.totalorder %v2991_v51, %v3153_v25  ;;  %vm1407_vm10 = vcmp.eq.s32.totalorder %v2987_v46, %v3153_v25  ;;  %v1240_v18 = vrot.slane %v1239_v14, 4  ;;  %v2233_v54 = vsel %vm1399_vm7, 1.0, %v2587_v4 }
 0x2f7   : > { %2249 = vmatpush1.msk.msra.mxu1 %vm1412_vm14, %v2589_v43  ;;  %v2237_v30 = vsel %vm1403_vm6, 1.0, %v2587_v4  ;;  %v1253_v59 = vrot.slane %v1252_v50, 4  ;;  %v3218_v63 = vadd.f32 %v2233_v54, %v2232_v26  ;;  %v2241_v13 = vsel %vm1407_vm10, 1.0, %v2587_v4 }
 0x2f8   : > { %2250 = vmatprep.subr.msk.mxu1 %vm1411_vm1, %v2589_v43  ;;  %v1241_v20 = vadd.f32 %v1240_v18, %v1239_v14  ;;  %v3220_v31 = vadd.f32 %v2237_v30, %v2236_v55  ;;  %v2244_v47 = vsel %vm1410_vm15, 1.0, %v2587_v4  ;;  %v2245_v21 = vsel %vm1411_vm1, 1.0, %v2587_v4 }
 0x2f9   : > { %2251 = vmatpush1.msk.msra.mxu1 %vm1410_vm15, %v2589_v43  ;;  %vm1405_vm11 = vcmp.eq.s32.totalorder %v2982_v35, %v3153_v25  ;;  %v1254_v45 = vadd.f32 %v1253_v59, %v1252_v50  ;;  %v3236_v1 = vadd.f32 %v2241_v13, %v2240_v17  ;;  %vm1404_vm12 = vcmp.eq.s32.totalorder %v2982_v35, %v3150_v38 }
 0x2fa   : > { %2252 = vmatprep.subr.msk.mxu1 %vm1409_vm9, %v2589_v43  ;;  %v1242_v53 = vrot.slane %v1241_v20, 2  ;;  %v3243_v52 = vadd.f32 %v2245_v21, %v2244_v47  ;;  %v1295_v2 = vrot.slane %v1294_v10, 4  ;;  %vm1401_vm15 = vcmp.eq.s32.totalorder %v2976_v22, %v3153_v25 }
 0x2fb   : > { %2253 = vmatpush1.msk.msra.mxu1 %vm1408_vm8, %v2589_v43  ;;  %v1255_v16 = vrot.slane %v1254_v45, 2  ;;  %v1283_v24 = vadd.f32 %v1282_v44, %v1281_v42  ;;  %vm1400_vm1 = vcmp.eq.s32.totalorder %v2976_v22, %v3150_v38  ;;  %v2239_v13 = vsel %vm1405_vm11, 1.0, %v2587_v4  ;;  %v1855_v38 = vld [vmem:[#allocation5 + $0x28] sm:$0xff] }
 0x2fc   : > { %2254 = vmatprep.subr.msk.mxu1 %vm1407_vm10, %v2589_v43  ;;  %v1243_v46 = vadd.f32 %v1242_v53, %v1241_v20  ;;  %v1296_v60 = vadd.f32 %v1295_v2, %v1294_v10  ;;  %v2235_v10 = vsel %vm1401_vm15, 1.0, %v2587_v4  ;;  %v2234_v20 = vsel %vm1400_vm1, 1.0, %v2587_v4 }
 0x2fd   : > { %2255 = vmatpush1.msk.msra.mxu1 %vm1406_vm3, %v2589_v43  ;;  %v1256_v6 = vadd.f32 %v1255_v16, %v1254_v45  ;;  %vm1450_vm3 = vcmask 523264   ;;  %v1284_v8 = vrot.slane %v1283_v24, 2  ;;  %v1861_v59 = vadd.f32 %v2235_v10, %v2234_v20  ;;  %v3322_v16 = vpop.permute.xlu1 %1577 }
 0x2fe   : > { %2256 = vmatprep.subr.msk.mxu1 %vm1405_vm11, %v2589_v43  ;;  %v1244_v61 = vrot.slane %v1243_v46, 1  ;;  %v1297_v62 = vrot.slane %v1296_v60, 2  ;;  %v2238_v47 = vsel %vm1404_vm12, 1.0, %v2587_v4  ;;  %v2243_v53 = vsel %vm1409_vm9, 1.0, %v2587_v4 }
 0x2ff   : > { %2257 = vmatpush1.msk.msra.mxu1 %vm1404_vm12, %v2589_v43  ;;  %v1257_v48 = vrot.slane %v1256_v6, 1  ;;  %v1285_v58 = vadd.f32 %v1284_v8, %v1283_v24  ;;  %v1867_v21 = vadd.f32 %v2239_v13, %v2238_v47  ;;  %v2242_v22 = vsel %vm1408_vm8, 1.0, %v2587_v4  ;;  %v1851_v24 = vld [vmem:[#allocation5 + $0x8] sm:$0xff]  ;;  %v1857_v8 = vld [vmem:[#allocation5 + $0x38] sm:$0xff] }
 0x300   : > { %2258 = vmatprep.subr.msk.mxu1 %vm1403_vm6, %v2589_v43  ;;  %v1245_v57 = vadd.f32 %v1244_v61, %v1243_v46  ;;  %v1298_v11 = vadd.f32 %v1297_v62, %v1296_v60  ;;  %v1873_v45 = vadd.f32 %v2243_v53, %v2242_v22  ;;  %v2247_v2 = vsel %vm1413_vm13, 1.0, %v2587_v4  ;;  %v1555_v13 = vld [vmem:[%s3487_s9 + $0x18] sm:$0xff] }
 0x301   : > { %2259 = vmatpush1.msk.msra.mxu1 %vm1402_vm5, %v2589_v43  ;;  %v1258_v15 = vadd.f32 %v1257_v48, %v1256_v6  ;;  %v1286_v19 = vrot.slane %v1285_v58, 1  ;;  %v2246_v35 = vsel %vm1412_vm14, 1.0, %v2587_v4  ;;  %v3324_v61 = vpop.permute.xlu1 %1567  ;;  %vm1890_vm5 = vcmask 7168  }
 0x302   : > { %2260 = vmatprep.subr.msk.mxu1 %vm1401_vm15, %v2589_v43  ;;  %2399 = vrcp.f32 %v1245_v57  ;;  %v1299_v42 = vrot.slane %v1298_v11, 1  ;;  %v1879_v46 = vadd.f32 %v2247_v2, %v2246_v35  ;;  %v1573_v35 = vpop.permute.xlu0 %1572 }
 0x303   : > { %2261 = vmatpush1.msk.msra.mxu1 %vm1400_vm1, %v2589_v43  ;;  %2401 = vlog2.f32 %v1245_v57  ;;  %v1287_v0 = vadd.f32 %v1286_v19, %v1285_v58  ;;  %v1853_v57 = vld [vmem:[#allocation5 + $0x18] sm:$0xff] }
 0x304   : > { %2262 = vmatprep.subr.msk.mxu1 %vm1399_vm7, %v2589_v43  ;;  %2403 = vrcp.f32 %v1258_v15 }
 0x305   : > { %2263 = vmatpush1.msk.msra.mxu1 %vm1398_vm0, %v2589_v43  ;;  %2405 = vlog2.f32 %v1258_v15  ;;  %v1300_v43 = vadd.f32 %v1299_v42, %v1298_v11  ;;  %vm1798_vm0 = vcmask 1040384   ;;  %v3326_v51 = vpop.permute.xlu1 %1693 }
 0x306   : > { %2264 = vmatmul.mubr.msk.f32.vlgmr.msra.gmra.mxu1 %vm1450_vm3, %v1446_v29 }
 0x307   : > { %1533 = vmatprep.mubr.f32.mxu1 %v2587_v4 }
 0x30a   : > { %2265 = vmatmul.mubr.msk.f32.gmra.mxu1 %vm1450_vm3, %v1447_v12 }
 0x30b   : > { %1539 = vmatprep.mubr.f32.mxu1 %v2587_v4 }
 0x30e   : > { %2266 = vmatmul.mubr.msk.f32.gmra.mxu1 %vm1450_vm3, %v1448_v23 }
 0x30f   : > { %1545 = vmatprep.mubr.f32.mxu1 %v2587_v4  ;;  %v2400_v28 = vpop.eup %2399 }
 0x310   : > { %v2402_v49 = vpop.eup %2401  ;;  %v1302_v14 = vmul.f32 %v2400_v28, %v1287_v0 }
 0x311   : > { %v2404_v7 = vpop.eup %2403  ;;  %v1306_v44 = vmul.f32 0.6931472, %v2402_v49 }
 0x312   : > { %2267 = vmatmul.mubr.msk.f32.gmra.mxu1 %vm1450_vm3, %v1449_v5  ;;  %v2406_v9 = vpop.eup %2405  ;;  %v1304_v26 = vmul.f32 %v2404_v7, %v1300_v43 }
 0x313   : > { %1656 = vmatprep.mubr.f32.mxu1 %v2587_v4  ;;  %v1308_v18 = vmul.f32 0.6931472, %v2406_v9  ;;  %v1309_v50 = vsub.f32 %v1302_v14, %v1306_v44 }
 0x315   : > { %v1310_v54 = vsub.f32 %v1304_v26, %v1308_v18  ;;  %v1799_v55 = vsel %vm1798_vm0, %v1309_v50, 0.0 }
 0x317   : > { %v1800_v30 = vsel %vm1798_vm0, %v1310_v54, 0.0 }
 0x318   : > { %v1801_v17 = vadd.f32 %v1800_v30, %v1799_v55 }
 0x31a   : > { %1802 = vadd.xlane.f32.xlu1 %v1801_v17 }
 0x31e   : > { %1862 = vadd.xlane.f32.xlu1 %v1861_v59 }
 0x322   : > { %1868 = vadd.xlane.f32.xlu1 %v1867_v21 }
 0x326   : > { %1874 = vadd.xlane.f32.xlu1 %v1873_v45 }
 0x32a   : > { %1880 = vadd.xlane.f32.xlu1 %v1879_v46 }
 0x3a3   : > { %v3328_v6 = vpop.xlane.xlu1 %1802 }
 0x3a7   : > { %v1863_v25 = vpop.xlane.xlu1 %1862 }
 0x3a8   : > { %v1883_v29 = vadd.f32 %v1863_v25, %v1851_v24 }
 0x3aa   : > { %1892 = vst.msk [vmem:[#allocation5 + $0x8] sm:$0xff] %vm1890_vm5, %v1883_v29 }
 0x3ab   : > { %v1869_v48 = vpop.xlane.xlu1 %1868 }
 0x3ac   : > { %v1885_v56 = vadd.f32 %v1869_v48, %v1853_v57 }
 0x3ae   : > { %1894 = vst.msk [vmem:[#allocation5 + $0x18] sm:$0xff] %vm1890_vm5, %v1885_v56 }
 0x3af   : > { %v1875_v60 = vpop.xlane.xlu1 %1874 }
 0x3b0   : > { %v1887_v15 = vadd.f32 %v1875_v60, %v1855_v38  ;;  %v1563_v38 = vpop.permute.xlu0 %1562 }
 0x3b2   : > { %1896 = vst.msk [vmem:[#allocation5 + $0x28] sm:$0xff] %vm1890_vm5, %v1887_v15 }
 0x3b3   : > { %v1881_v12 = vpop.xlane.xlu1 %1880 }
 0x3b4   : > { %v1889_v62 = vadd.f32 %v1881_v12, %v1857_v8 }
 0x3b6   : > { %1898 = vst.msk [vmem:[#allocation5 + $0x38] sm:$0xff] %vm1890_vm5, %v1889_v62 }
 0x3c6   : > { %v1529_v58 = vpop.f32.mrf.mxu1 }
 0x3c7   : > { %v1815_v23 = vsub.f32 %v2864_v41, %v1529_v58 }
 0x3c8   : > { %v1531_v11 = vpop.f32.mrf.mxu1 }
 0x3c9   : > { %v1816_v19 = vsub.f32 %v2861_v40, %v1531_v11  ;;  %v1823_v42 = vmul.f32 %v1815_v23, %v1815_v23 }
 0x3ca   : > { %v1535_v5 = vpop.f32.mrf.mxu1 }
 0x3cb   : > { %v1824_v0 = vmul.f32 %v1816_v19, %v1816_v19  ;;  %v1817_v28 = vsub.f32 %v2858_v39, %v1535_v5 }
 0x3cc   : > { %v1537_v49 = vpop.f32.mrf.mxu1 }
 0x3cd   : > { %v1831_v43 = vadd.f32 %v1824_v0, %v1823_v42  ;;  %v1825_v14 = vmul.f32 %v1817_v28, %v1817_v28  ;;  %v1818_v7 = vsub.f32 %v2855_v37, %v1537_v49  ;;  %v2407_v28 = vld [vmem:[%s2721_s23] sm:$0xff] }
 0x3ce   : > { %v1541_v44 = vpop.f32.mrf.mxu1 }
 0x3cf   : > { %v1832_v9 = vadd.f32 %v1831_v43, %v1825_v14  ;;  %v1826_v26 = vmul.f32 %v1818_v7, %v1818_v7  ;;  %v1819_v18 = vsub.f32 %v2852_v36, %v1541_v44  ;;  %v1554_v36 = vld [vmem:[%s3487_s9 + $0x10] sm:$0xff] }
 0x3d0   : > { %v1543_v50 = vpop.f32.mrf.mxu1 }
 0x3d1   : > { %v1833_v41 = vadd.f32 %v1832_v9, %v1826_v26  ;;  %v1827_v54 = vmul.f32 %v1819_v18, %v1819_v18  ;;  %v1820_v40 = vsub.f32 %v2849_v34, %v1543_v50  ;;  %v1552_v34 = vld [vmem:[%s3487_s9] sm:$0xff] }
 0x3d2   : > { %v1547_v55 = vpop.f32.mrf.mxu1 }
 0x3d3   : > { %v1834_v30 = vadd.f32 %v1833_v41, %v1827_v54  ;;  %v1828_v17 = vmul.f32 %v1820_v40, %v1820_v40  ;;  %v1821_v39 = vsub.f32 %v2847_v33, %v1547_v55  ;;  %v1553_v33 = vld [vmem:[%s3487_s9 + $0x8] sm:$0xff] }
 0x3d4   : > { %v3341_v10 = vpop.f32.mrf.mxu1 }
 0x3d5   : > { %v1835_v20 = vadd.f32 %v1834_v30, %v1828_v17  ;;  %v1829_v59 = vmul.f32 %v1821_v39, %v1821_v39  ;;  %1616 = vmatprep.subr.mxu1 %v3341_v10  ;;  %v1822_v9 = vsub.f32 %v2845_v32, %v3341_v10 }
 0x3d6   : > { %1617 = vmatpush1.msra.mxu1 %v1547_v55 }
 0x3d7   : > { %1618 = vmatprep.subr.mxu1 %v1543_v50  ;;  %v3344_v37 = vadd.f32 %v1835_v20, %v1829_v59  ;;  %v1830_v41 = vmul.f32 %v1822_v9, %v1822_v9 }
 0x3d8   : > { %1619 = vmatpush1.msra.mxu1 %v1541_v44 }
 0x3d9   : > { %1620 = vmatprep.subr.mxu1 %v1537_v49  ;;  %v1837_v40 = vadd.f32 %v3344_v37, %v1830_v41  ;;  %v1850_v37 = vld [vmem:[#allocation5] sm:$0xff]  ;;  %v1930_v41 = vld [vmem:[#allocation5 + $0x38] sm:$0xff] (%p610_p6) }
 0x3da   : > { %1621 = vmatpush1.msra.mxu1 %v1535_v5 }
 0x3db   : > { %1622 = vmatprep.subr.mxu1 %v1531_v11 }
 0x3dc   : > { %1623 = vmatpush1.msra.mxu1 %v1529_v58 }
 0x3dd   : > { %2268 = vmatmul.mubr.msk.f32.vlgmr.msra.gmra.mxu1 %vm802_vm4, %v1552_v34 }
 0x3de   : > { %1662 = vmatprep.mubr.f32.mxu1 %v2587_v4 }
 0x3e1   : > { %2269 = vmatmul.mubr.msk.f32.gmra.mxu1 %vm802_vm4, %v1553_v33 }
 0x3e2   : > { %1668 = vmatprep.mubr.f32.mxu1 %v2587_v4 }
 0x3e5   : > { %2270 = vmatmul.mubr.msk.f32.gmra.mxu1 %vm802_vm4, %v1554_v36 }
 0x3e6   : > { %1674 = vmatprep.mubr.f32.mxu1 %v2587_v4 }
 0x3e9   : > { %2271 = vmatmul.mubr.msk.f32.gmra.mxu1 %vm802_vm4, %v1555_v13  ;;  %v1852_v13 = vld [vmem:[#allocation5 + $0x10] sm:$0xff] }
 0x49d   : > { %v1658_v47 = vpop.f32.mrf.mxu1 }
 0x49e   : > { %v1659_v62 = vadd.f32 %v1658_v47, %v1563_v38 }
 0x49f   : > { %v1660_v21 = vpop.f32.mrf.mxu1 }
 0x4a0   : > { %v1661_v8 = vadd.f32 %v1660_v21, %v1563_v38  ;;  %v1681_v19 = vmax.f32 %v1659_v62, 0.0 }
 0x4a1   : > { %v1664_v53 = vpop.f32.mrf.mxu1 }
 0x4a2   : > { %v1665_v60 = vadd.f32 %v1664_v53, %v3324_v61 }
 0x4a3   : > { %v1666_v22 = vpop.f32.mrf.mxu1 }
 0x4a4   : > { %v1667_v48 = vadd.f32 %v1666_v22, %v3324_v61  ;;  %v1683_v11 = vmax.f32 %v1665_v60, 0.0  ;;  %v1689_v61 = vld [vmem:[%s3489_s11] sm:$0xf] }
 0x4a5   : > { %v1670_v45 = vpop.f32.mrf.mxu1 }
 0x4a6   : > { %v1671_v57 = vadd.f32 %v1670_v45, %v1573_v35  ;;  %v1684_v23 = vmax.f32 %v1667_v48, 0.0  ;;  %v1797_v48 = vld [vmem:[#allocation3] sm:$0x1] }
 0x4a7   : > { %v1672_v2 = vpop.f32.mrf.mxu1 }
 0x4a8   : > { %v1673_v29 = vadd.f32 %v1672_v2, %v1573_v35  ;;  %v1685_v58 = vmax.f32 %v1671_v57, 0.0  ;;  %v1854_v2 = vld [vmem:[#allocation5 + $0x20] sm:$0xff]  ;;  %v1775_v57 = vld [vmem:[#allocation2] sm:$0x1] }
 0x4a9   : > { %v1676_v46 = vpop.f32.mrf.mxu1 }
 0x4aa   : > { %v1677_v24 = vadd.f32 %v1676_v46, %v3322_v16  ;;  %v1686_v12 = vmax.f32 %v1673_v29, 0.0 }
 0x4ab   : > { %v1678_v25 = vpop.f32.mrf.mxu1 }
 0x4ac   : > { %v1679_v4 = vadd.f32 %v1678_v25, %v3322_v16  ;;  %v1687_v15 = vmax.f32 %v1677_v24, 0.0  ;;  %v1682_v16 = vmax.f32 %v1661_v8, 0.0  ;;  %v1856_v25 = vld [vmem:[#allocation5 + $0x30] sm:$0xff]  ;;  %v1814_v8 = vld [vmem:[#allocation4] sm:$0x1] }
 0x4ae   : > { %v1688_v56 = vmax.f32 %v1679_v4, 0.0 }
 0x4b0   : > { %1723 = vmatprep.subr.mxu0 %v1688_v56 }
 0x4b1   : > { %1724 = vmatpush1.msra.mxu0 %v1687_v15 }
 0x4b2   : > { %1725 = vmatprep.subr.mxu0 %v1686_v12 }
 0x4b3   : > { %1726 = vmatpush1.msra.mxu0 %v1685_v58 }
 0x4b4   : > { %1727 = vmatprep.subr.mxu0 %v1684_v23 }
 0x4b5   : > { %1728 = vmatpush1.msra.mxu0 %v1683_v11 }
 0x4b6   : > { %1729 = vmatprep.subr.mxu0 %v1682_v16 }
 0x4b7   : > { %1730 = vmatpush1.msra.mxu0 %v1681_v19 }
 0x4b8   : > { %2272 = vmatmul.mubr.msk.f32.vlgmr.msra.gmra.mxu0 %vm802_vm4, %v1689_v61 }
 0x578   : > { %v1765_v5 = vpop.f32.mrf.mxu0 }
 0x579   : > { %v1766_v42 = vadd.f32 %v1765_v5, %v3326_v51 }
 0x57a   : > { %v1767_v0 = vpop.f32.mrf.mxu0 }
 0x57b   : > { %v1777_v49 = vsub.f32 %v1766_v42, %v2407_v28  ;;  %v1768_v43 = vadd.f32 %v1767_v0, %v3326_v51  ;;  %v1926_v28 = vld [vmem:[#allocation5 + $0x18] sm:$0xff] (%p610_p6) }
 0x57d   : > { %v1779_v14 = vmul.f32 %v1777_v49, %v1777_v49  ;;  %v1772_v7 = vcombine.low %v1766_v42, %v1768_v43  ;;  %v1778_v44 = vsub.f32 %v1768_v43, %v2729_v3  ;;  %v1804_v3 = vrot.slane %v3328_v6, 4  ;;  %v1924_v42 = vld [vmem:[#allocation5 + $0x8] sm:$0xff] (%p610_p6) }
 0x57e   : > { %v1928_v43 = vld [vmem:[#allocation5 + $0x28] sm:$0xff] (%p610_p6) }
 0x57f   : > { %1774 = vst [vmem:[%s2726_s26] sm:$0xff] %v1772_v7  ;;  %v1780_v26 = vmul.f32 %v1778_v44, %v1778_v44  ;;  %v1781_v18 = vsel %vm672_vm2, %v1779_v14, 0.0  ;;  %v1805_v32 = vadd.f32 %v1804_v3, %v3328_v6  ;;  %v1933_v7 = vmul.f32 (%p610_p6), 0.001953125, %v1924_v42 }
 0x581   : > { %v1782_v50 = vsel %vm672_vm2, %v1780_v26, 0.0  ;;  %v1806_v51 = vrot.slane %v1805_v32, 2  ;;  %vm1795_vm2 = vcmask 0  }
 0x582   : > { %v1783_v54 = vadd.f32 %v1782_v50, %v1781_v18  ;;  %v1935_v50 = vmul.f32 (%p610_p6), 0.001953125, %v1926_v28 }
 0x583   : > { %v1807_v10 = vadd.f32 %v1806_v51, %v1805_v32  ;;  %v1941_v51 = vadd.f32 (%p610_p6), 1e-07, %v1933_v7 }
 0x584   : > { %1784 = vadd.xlane.f32.xlu0 %v1783_v54 }
 0x585   : > { %v1808_v33 = vrot.slane %v1807_v10, 1 }
 0x587   : > { %v1809_v53 = vadd.f32 %v1808_v33, %v1807_v10 }
 0x588   : > { %1838 = vadd.xlane.f32.xlu0 %v1837_v40  ;;  %v1937_v40 = vmul.f32 (%p610_p6), 0.001953125, %v1928_v43 }
 0x58a   : > { %v1945_v10 = vadd.f32 (%p610_p6), 1e-07, %v1937_v40 }
 0x58c   : > { %1859 = vadd.xlane.f32.xlu0 %v3218_v63 }
 0x590   : > { %1865 = vadd.xlane.f32.xlu0 %v3220_v31 }
 0x594   : > { %1871 = vadd.xlane.f32.xlu0 %v3236_v1 }
 0x598   : > { %1877 = vadd.xlane.f32.xlu0 %v3243_v52 }
 0x60d   : > { %v1785_v55 = vpop.xlane.xlu0 %1784 }
 0x60e   : > { %v1786_v30 = vrot.slane %v1785_v55, 4 }
 0x610   : > { %v1787_v17 = vadd.f32 %v1786_v30, %v1785_v55  ;;  %v1939_v30 = vmul.f32 (%p610_p6), 0.001953125, %v1930_v41 }
 0x611   : > { %v1839_v39 = vpop.xlane.xlu0 %1838 }
 0x612   : > { %v1788_v20 = vrot.slane %v1787_v17, 2  ;;  %v1840_v59 = vrot.slane %v1839_v39, 4 }
 0x614   : > { %v1841_v63 = vadd.f32 %v1840_v59, %v1839_v39  ;;  %v1789_v34 = vadd.f32 %v1788_v20, %v1787_v17  ;;  %v1943_v17 = vadd.f32 (%p610_p6), 1e-07, %v1935_v50  ;;  %v1947_v59 = vadd.f32 (%p610_p6), 1e-07, %v1939_v30 }
 0x615   : > { %v1860_v31 = vpop.xlane.xlu0 %1859 }
 0x616   : > { %v1842_v1 = vrot.slane %v1841_v63, 2  ;;  %v1882_v36 = vadd.f32 %v1860_v31, %v1850_v37  ;;  %v1790_v52 = vrot.slane %v1789_v34, 1 }
 0x618   : > { %1891 = vst.msk [vmem:[#allocation5] sm:$0xff] %vm1890_vm5, %v1882_v36  ;;  %v1791_v6 = vadd.f32 %v1790_v52, %v1789_v34  ;;  %v1843_v47 = vadd.f32 %v1842_v1, %v1841_v63 }
 0x619   : > { %v1866_v21 = vpop.xlane.xlu0 %1865 }
 0x61a   : > { %v1884_v22 = vadd.f32 %v1866_v21, %v1852_v13  ;;  %2289 = vpush %v1791_v6  ;;  %v1844_v45 = vrot.slane %v1843_v47, 1 }
 0x61b   : > { %2291 = vpush %v1809_v53 }
 0x61c   : > { %1893 = vst.msk [vmem:[#allocation5 + $0x10] sm:$0xff] %vm1890_vm5, %v1884_v22  ;;  %v1845_v35 = vadd.f32 %v1844_v45, %v1843_v47 }
 0x61d   : > { %v1872_v46 = vpop.xlane.xlu0 %1871 }
 0x61e   : > { %v1886_v24 = vadd.f32 %v1872_v46, %v1854_v2  ;;  %2293 = vpush %v1845_v35 }
 0x61f   : > { %v1923_v5 = vld [vmem:[#allocation5] sm:$0xff] (%p610_p6) }
 0x620   : > { %1895 = vst.msk [vmem:[#allocation5 + $0x20] sm:$0xff] %vm1890_vm5, %v1886_v24  ;;  %v1932_v14 = vmul.f32 (%p610_p6), 0.001953125, %v1923_v5 }
 0x621   : > { %v1878_v29 = vpop.xlane.xlu0 %1877 }
 0x622   : > { %v1888_v4 = vadd.f32 %v1878_v29, %v1856_v25  ;;  %v1940_v32 = vadd.f32 (%p610_p6), 1e-07, %v1932_v14 }
 0x623   : > { %v1925_v0 = vld [vmem:[#allocation5 + $0x10] sm:$0xff] (%p610_p6) }
 0x624   : > { %1897 = vst.msk [vmem:[#allocation5 + $0x30] sm:$0xff] %vm1890_vm5, %v1888_v4  ;;  %v1934_v44 = vmul.f32 (%p610_p6), 0.001953125, %v1925_v0 }
 0x626   : > { %v1942_v55 = vadd.f32 (%p610_p6), 1e-07, %v1934_v44 }
 0x627   : > { %v1927_v49 = vld [vmem:[#allocation5 + $0x20] sm:$0xff] (%p610_p6) }
 0x628   : > { %v1936_v54 = vmul.f32 (%p610_p6), 0.001953125, %v1927_v49 }
 0x62a   : > { %v1944_v39 = vadd.f32 (%p610_p6), 1e-07, %v1936_v54 }
 0x62b   : > { %v1929_v18 = vld [vmem:[#allocation5 + $0x30] sm:$0xff] (%p610_p6) }
 0x62c   : > { %v1938_v3 = vmul.f32 (%p610_p6), 0.001953125, %v1929_v18 }
 0x62e   : > { %v1946_v20 = vadd.f32 (%p610_p6), 1e-07, %v1938_v3 }
 0x64b   : > { %s2290_s23 = spop %2289 }
 0x64c   : > { %v1793_v56 = vstv %s2290_s23  ;;  %s2292_s26 = spop %2291 }
 0x64d   : > { %v1794_v38 = vadd.f32 %v1793_v56, %v1775_v57  ;;  %v1811_v60 = vstv %s2292_s26 }
 0x64e   : > { %v1812_v15 = vadd.f32 %v1811_v60, %v1797_v48 }
 0x64f   : > { %1796 = vst.msk [vmem:[#allocation2] sm:$0x1] %vm1795_vm2, %v1794_v38  ;;  %s2294_s28 = spop %2293  ;;  %1900 = sbr.rel (!%p610_p6) target bundleno = 1882 (0x75a), region = 80 }
 0x650   : > { %1813 = vst.msk [vmem:[#allocation3] sm:$0x1] %vm1795_vm2, %v1812_v15  ;;  %v1847_v12 = vstv %s2294_s28 }
 0x651   : > { %v1848_v62 = vadd.f32 %v1847_v12, %v1814_v8 }
 0x653   : > { %1849 = vst.msk [vmem:[#allocation4] sm:$0x1] %vm1795_vm2, %v1848_v62 }
 0x656   : > { %v1901_v58 = vld [vmem:[#allocation2] sm:$0x1] }
 0x657   : > { %v1917_v23 = vld [vmem:[#allocation3] sm:$0x1]  ;;  %v1903_v16 = vmul.f32 0.5, %v1901_v58 }
 0x658   : > { %v1918_v19 = vmul.f32 0.5, %v1917_v23 }
 0x659   : > { %2408 = vlog2.f32 %v1903_v16  ;;  %v1909_v9 = vmul.f32 0.0009765625, %v1903_v16 }
 0x65a   : > { %v1919_v11 = vld [vmem:[#allocation4] sm:$0x1] }
 0x65b   : > { %v1920_v61 = vmul.f32 %v1919_v11, %v2783_v27  ;;  %2410 = vrsqrt.f32 %v1909_v9  ;;  %vm1912_vm4 = vcmp.eq.f32.partialorder %v1909_v9, inf  ;;  %v1915_v31 = vand.u32 2147483648, %v1909_v9 }
 0x65c   : > { %2412 = vlog2.f32 %v1940_v32  ;;  %vm1914_vm13 = vcmp.eq.f32.partialorder %v1909_v9, 0.0 }
 0x65d   : > { %v1921_v26 = vmul.f32 0.5, %v1920_v61  ;;  %2414 = vlog2.f32 %v1941_v51 }
 0x65e   : > { %2416 = vlog2.f32 %v1942_v55 }
 0x65f   : > { %v3399_v27 = vadd.f32 %v1921_v26, %v1918_v19  ;;  %2418 = vlog2.f32 %v1943_v17 }
 0x660   : > { %2420 = vlog2.f32 %v1944_v39 }
 0x661   : > { %2004 = vst.msk [vmem:[#allocation12] sm:$0x1] %vm1795_vm2, %v3399_v27  ;;  %2422 = vlog2.f32 %v1945_v10 }
 0x662   : > { %2424 = vlog2.f32 %v1946_v20 }
 0x663   : > { %2426 = vlog2.f32 %v1947_v59 }
 0x666   : > { %v2409_v37 = vpop.eup %2408 }
 0x667   : > { %v1905_v63 = vmul.f32 0.6931472, %v2409_v37 }
 0x668   : > { %v2411_v34 = vpop.eup %2410 }
 0x669   : > { %v1906_v33 = vmul.f32 1024.0, %v1905_v63  ;;  %v1911_v1 = vmul.f32 %v2411_v34, %v1909_v9  ;;  %v2413_v36 = vpop.eup %2412 }
 0x66a   : > { %v2415_v6 = vpop.eup %2414  ;;  %v1949_v21 = vmul.f32 0.6931472, %v2413_v36 }
 0x66b   : > { %v1907_v52 = vmul.f32 0.5, %v1906_v33  ;;  %v1913_v13 = vsel %vm1912_vm4, %v1909_v9, %v1911_v1  ;;  %v2417_v53 = vpop.eup %2416  ;;  %v1951_v22 = vmul.f32 0.6931472, %v2415_v6 }
 0x66c   : > { %v1916_v47 = vsel %vm1914_vm13, %v1915_v31, %v1913_v13  ;;  %v2419_v45 = vpop.eup %2418  ;;  %v1953_v2 = vmul.f32 0.6931472, %v2417_v53  ;;  %v1964_v35 = vmul.f32 %v1949_v21, %v1932_v14 }
 0x66d   : > { %2002 = vst.msk [vmem:[#allocation9] sm:$0x1] %vm1795_vm2, %v1907_v52  ;;  %2003 = vst.msk [vmem:[#allocation11] sm:$0x1] %vm1795_vm2, %v1916_v47  ;;  %v2421_v46 = vpop.eup %2420  ;;  %v1955_v24 = vmul.f32 0.6931472, %v2419_v45  ;;  %v1965_v25 = vmul.f32 %v1951_v22, %v1933_v7  ;;  %v2000_v18 = vadd.f32 %v3399_v27, %v1907_v52 }
 0x66e   : > { %v2423_v29 = vpop.eup %2422  ;;  %v1957_v4 = vmul.f32 0.6931472, %v2421_v46  ;;  %v1966_v57 = vmul.f32 %v1953_v2, %v1934_v44  ;;  %v1972_v48 = vsel %vm1890_vm5, %v1964_v35, 0.0 }
 0x66f   : > { %v2425_v56 = vpop.eup %2424  ;;  %v1959_v38 = vmul.f32 0.6931472, %v2423_v29  ;;  %v1967_v60 = vmul.f32 %v1955_v24, %v1935_v50  ;;  %v1973_v15 = vsel %vm1890_vm5, %v1965_v25, 0.0  ;;  %2001 = vst.msk [vmem:[#allocation7] sm:$0x1] %vm1795_vm2, %v2000_v18 }
 0x670   : > { %v2427_v8 = vpop.eup %2426  ;;  %v1961_v12 = vmul.f32 0.6931472, %v2425_v56  ;;  %v1968_v62 = vmul.f32 %v1957_v4, %v1936_v54  ;;  %v1974_v58 = vadd.f32 %v1973_v15, %v1972_v48  ;;  %v1975_v23 = vsel %vm1890_vm5, %v1966_v57, 0.0 }
 0x671   : > { %v1963_v11 = vmul.f32 0.6931472, %v2427_v8  ;;  %v1969_v16 = vmul.f32 %v1959_v38, %v1937_v40  ;;  %v1977_v19 = vsel %vm1890_vm5, %v1967_v60, 0.0 }
 0x672   : > { %v1976_v61 = vadd.f32 %v1975_v23, %v1974_v58  ;;  %v1970_v5 = vmul.f32 %v1961_v12, %v1938_v3  ;;  %v1979_v42 = vsel %vm1890_vm5, %v1968_v62, 0.0 }
 0x673   : > { %v1971_v28 = vmul.f32 %v1963_v11, %v1939_v30  ;;  %v1981_v49 = vsel %vm1890_vm5, %v1969_v16, 0.0 }
 0x674   : > { %v1978_v0 = vadd.f32 %v1977_v19, %v1976_v61  ;;  %v1983_v14 = vsel %vm1890_vm5, %v1970_v5, 0.0 }
 0x675   : > { %v1985_v44 = vsel %vm1890_vm5, %v1971_v28, 0.0 }
 0x676   : > { %v1980_v43 = vadd.f32 %v1979_v42, %v1978_v0 }
 0x678   : > { %v1982_v7 = vadd.f32 %v1981_v49, %v1980_v43 }
 0x67a   : > { %v1984_v9 = vadd.f32 %v1983_v14, %v1982_v7 }
 0x67c   : > { %v1986_v26 = vadd.f32 %v1985_v44, %v1984_v9 }
 0x67e   : > { %1987 = vadd.xlane.f32.xlu0 %v1986_v26 }
 0x707   : > { %v1988_v50 = vpop.xlane.xlu0 %1987 }
 0x708   : > { %v1989_v41 = vrot.slane %v1988_v50, 4 }
 0x70a   : > { %v1990_v54 = vadd.f32 %v1989_v41, %v1988_v50 }
 0x70c   : > { %v1991_v40 = vrot.slane %v1990_v54, 2 }
 0x70e   : > { %v1992_v3 = vadd.f32 %v1991_v40, %v1990_v54 }
 0x710   : > { %v1993_v32 = vrot.slane %v1992_v3, 1 }
 0x712   : > { %v1994_v51 = vadd.f32 %v1993_v32, %v1992_v3 }
 0x714   : > { %2295 = vpush %v1994_v51 }
 0x745   : > { %s2296_s29 = spop %2295 }
 0x746   : > { %v1996_v55 = vstv %s2296_s29 }
 0x747   : > { %v1997_v30 = vsub.f32 0.0, %v1996_v55 }
 0x749   : > { %v1998_v17 = vmul.f32 1.442695, %v1997_v30 }
 0x74b   : > { %2428 = vpow2.f32 %v1998_v17 }
 0x758   : > { %v2429_v39 = vpop.eup %2428 }
 0x759   : > { %2005 = vst.msk [vmem:[#allocation14] sm:$0x1] %vm1795_vm2, %v2429_v39 }
 0x75a PF: > { %s3510_s20 = sadd.s32 4294967295, %s2584_s0   ;;  %s2590_s2 = smov [#allocation9]  }
 0x75b   : > { %p3418_p7 = scmp.eq.s32.totalorder %s3510_s20, 1  ;;  %s2037_s24 = sshll.u32 %s2590_s2, 4  ;;  %s2038_s24 = int_to_ptr.vmem [resolvable:$true] %s2037_s24 }
 0x75c   : > { %s2591_s25 = smov [#allocation12]   ;;  %s2430_s27 = scalar_lea.vmem %s2038_s24, 16 }
 0x75d   : > { %s2059_s8 = sshll.u32 %s2591_s25, 4  ;;  %p2431_p8 = scmp.ne.s32.totalorder %s2038_s24, %s2430_s27  ;;  %s2060_s8 = int_to_ptr.vmem [resolvable:$true] %s2059_s8 }
 0x75e   : > { %s2436_s4 = scalar_lea.vmem %s2038_s24, 32  ;;  %p2437_p11 = scmp.lt.s32.totalorder %s2038_s24, %s2038_s24 }
 0x75f   : > { %p2432_p9 = pnand %p2431_p8, %p3418_p7  ;;  %p2438_p12 = scmp.lt.s32.totalorder %s2436_s4, %s2430_s27 }
 0x761   : > { %p2433_p10 = pneg %p2432_p9  ;;  %p2439_p13 = por %p2438_p12, %p2437_p11 }
 0x763   : > { %p2440_p0 = pnand %p2439_p13, %p2433_p10 }
 0x765   : > { %2443 = shalt.err (!%p2440_p0)
}
 0x766   : > { %2300 = dma.vmem_to_hbm [thread:$0]  (%p3418_p7), %s2038_s24, 16, %s3493_s15, [#allocation10]  }
 0x767   : > { %s2454_s26 = scalar_lea.vmem %s2060_s8, 16  ;;  %s2460_s28 = scalar_lea.vmem %s2060_s8, 32 }
 0x768   : > { %p2455_p1 = scmp.ne.s32.totalorder %s2060_s8, %s2454_s26  ;;  %p2461_p4 = scmp.lt.s32.totalorder %s2060_s8, %s2060_s8 }
 0x769   : > { %p2462_p5 = scmp.lt.s32.totalorder %s2460_s28, %s2454_s26 }
 0x76a   : > { %p2456_p2 = pnand %p2455_p1, %p3418_p7 }
 0x76b   : > { %p2463_p6 = por %p2462_p5, %p2461_p4 }
 0x76c   : > { %p2457_p3 = pneg %p2456_p2 }
 0x76e   : > { %p2464_p8 = pnand %p2463_p6, %p2457_p3 }
 0x770   : > { %2467 = shalt.err (!%p2464_p8)
}
 0x771   : > { %2304 = dma.vmem_to_hbm [thread:$0]  (%p3418_p7), %s2060_s8, 16, %s3495_s17, [#allocation13]  }
 0x772   : > { %s2592_s2 = smov [#allocation7]   ;;  %s2593_s25 = smov [#allocation11]  }
 0x773   : > { %s2026_s24 = sshll.u32 %s2592_s2, 4  ;;  %s2048_s27 = sshll.u32 %s2593_s25, 4  ;;  %s2027_s24 = int_to_ptr.vmem [resolvable:$true] %s2026_s24  ;;  %s2049_s27 = int_to_ptr.vmem [resolvable:$true] %s2048_s27 }
 0x774   : > { %s2478_s4 = scalar_lea.vmem %s2027_s24, 16  ;;  %s2484_s1 = scalar_lea.vmem %s2027_s24, 32 }
 0x775   : > { %p2479_p9 = scmp.ne.s32.totalorder %s2027_s24, %s2478_s4  ;;  %p2485_p12 = scmp.lt.s32.totalorder %s2027_s24, %s2027_s24 }
 0x776   : > { %p2486_p13 = scmp.lt.s32.totalorder %s2484_s1, %s2478_s4 }
 0x777   : > { %p2480_p10 = pnand %p2479_p9, %p3418_p7 }
 0x778   : > { %p2487_p0 = por %p2486_p13, %p2485_p12 }
 0x779   : > { %p2481_p11 = pneg %p2480_p10 }
 0x77b   : > { %p2488_p1 = pnand %p2487_p0, %p2481_p11 }
 0x77d   : > { %2491 = shalt.err (!%p2488_p1)
}
 0x77e   : > { %2298 = dma.vmem_to_hbm [thread:$0]  (%p3418_p7), %s2027_s24, 16, %s3492_s14, [#allocation8]  }
 0x77f   : > { %s2502_s26 = scalar_lea.vmem %s2049_s27, 16  ;;  %s2508_s28 = scalar_lea.vmem %s2049_s27, 32 }
 0x780   : > { %p2503_p2 = scmp.ne.s32.totalorder %s2049_s27, %s2502_s26  ;;  %p2509_p5 = scmp.lt.s32.totalorder %s2049_s27, %s2049_s27 }
 0x781   : > { %p2510_p6 = scmp.lt.s32.totalorder %s2508_s28, %s2502_s26 }
 0x782   : > { %p2504_p3 = pnand %p2503_p2, %p3418_p7 }
 0x783   : > { %p2511_p8 = por %p2510_p6, %p2509_p5 }
 0x784   : > { %p2505_p4 = pneg %p2504_p3 }
 0x786   : > { %p2512_p9 = pnand %p2511_p8, %p2505_p4 }
 0x788   : > { %2515 = shalt.err (!%p2512_p9)
}
 0x789   : > { %2302 = dma.vmem_to_hbm [thread:$0]  (%p3418_p7), %s2049_s27, 16, %s3494_s16, [#allocation10]  }
 0x78a   : > { %s2594_s2 = smov [#allocation14]  }
 0x78b   : > { %s2070_s24 = sshll.u32 %s2594_s2, 4  ;;  %s2071_s24 = int_to_ptr.vmem [resolvable:$true] %s2070_s24 }
 0x78c   : > { %s2526_s25 = scalar_lea.vmem %s2071_s24, 16  ;;  %s2532_s4 = scalar_lea.vmem %s2071_s24, 32 }
 0x78d   : > { %p2527_p10 = scmp.ne.s32.totalorder %s2071_s24, %s2526_s25  ;;  %p2533_p13 = scmp.lt.s32.totalorder %s2071_s24, %s2071_s24 }
 0x78e   : > { %p2534_p0 = scmp.lt.s32.totalorder %s2532_s4, %s2526_s25 }
 0x78f   : > { %p2528_p11 = pnand %p2527_p10, %p3418_p7 }
 0x790   : > { %p2535_p1 = por %p2534_p0, %p2533_p13 }
 0x791   : > { %p2529_p12 = pneg %p2528_p11 }
 0x793   : > { %p2536_p2 = pnand %p2535_p1, %p2529_p12 }
 0x795   : > { %2539 = shalt.err (!%p2536_p2)
}
 0x796   : > { %2306 = dma.vmem_to_hbm [thread:$0]  (%p3418_p7), %s2071_s24, 16, %s3496_s18, [#allocation13]  }
 0x797   : > { %2563 = dma.done.wait (%p3418_p7), [#allocation8], 16  }
 0x798   : > { %2565 = vsyncadd (%p3418_p7), [#allocation8], 4294967280 }
 0x799   : > { %2567 = dma.done.wait (%p3418_p7), [#allocation10], 32  }
 0x79a   : > { %2569 = vsyncadd (%p3418_p7), [#allocation10], 4294967264 }
 0x79b   : > { %2571 = dma.done.wait (%p3418_p7), [#allocation13], 32  }
 0x79c   : > { %2573 = vsyncadd (%p3418_p7), [#allocation13], 4294967264 }
 0x79d PF: > { %s34_s0 = sadd.s32 1, %s2584_s0   ;;  %s3512_s29 = smov %s2580_s30 }
 0x79e   : > { %p31_p3 = scmp.ge.s32.totalorder %s34_s0, 4   ;;  %s3513_s30 = smov %s3515_s19 }
 0x7a0   :  { %33 = sbr.rel (!%p31_p3) target bundleno = 9 (0x9), region = 151 }
 0x7a5   :  { %2111 = vsyncpa [#allocation8], 1 }
 0x7a6   :  { %2113 = vsyncpa [#allocation8 + $0x1], 1 }
 0x7a7   :  { %2114 = vsyncpa [#allocation10], 1 }
 0x7a8   :  { %2115 = vsyncpa [#allocation13], 1 }

</bundles_post_ra>
